<compile_context>
chip_gen: v7x
topology: tpu7x:2x2x1
jax: 0.10.0
libtpu: 0.0.40
codegen_flags: <defaults>
</compile_context>

<pallas_src>
import jax
import jax.numpy as jnp
import numpy as np
from jax.experimental import pallas as pl
from jax.experimental.pallas import tpu as pltpu


def decoder_kernel(enc_ref, xfh_ref, c_ref,
                   w_enc_ref, w_hid_ref, b_hid_ref,
                   w_gfh_ref, w_gs_ref, b_g_ref,
                   w_out_ref, b_out_ref,
                   logits_ref, hc_ref):
    BT, S, E = enc_ref.shape
    TH = c_ref.shape[-1]                 # 2*H == workingHiddenSize
    WH = w_enc_ref.shape[1]

    enc = enc_ref[...]                   # (BT, S, E)
    c_cat = c_ref[...]                   # (BT, 2H) == [c_fwd | c_bwd]

    # ---------------- attention ----------------
    # encOutL = encOutLinear(encoderOutputs) WITHOUT its bias: b_enc is folded
    # into b_hid offline (enc_l and hid_l are only ever summed).  Mosaic's
    # matmul path is 2-D, so flatten the leading (batch, seq) dims for a
    # single MXU call; the last (lane) dim is untouched so the reshape is a
    # free leading-dim merge.
    enc_l = jnp.dot(enc.reshape(BT * S, E), w_enc_ref[...],
                    preferred_element_type=jnp.float32).reshape(BT, S, WH)

    # hiddenL = hiddenLinear(cat(c_fwd, c_bwd)) + (b_hid + b_enc); c arrives
    # pre-concatenated, so there is no lane-axis concat inside the kernel.
    hid_l = jnp.dot(c_cat, w_hid_ref[...],
                    preferred_element_type=jnp.float32) + b_hid_ref[...]

    # attention weights: softmax over sum_{-1} tanh(encOutL + hiddenL)
    # TODO(synk): for production-sized S, tile this block over a trailing
    # "arbitrary" S grid axis (S tile multiple of 8; 16 for bf16) with an
    # online softmax + m/l/selected VMEM scratch instead of holding
    # (BT, S, WH) fully resident; size the tile from pltpu.get_tpu_info()
    # (64 MiB physical VMEM on v7x vs 128 MiB on v5e/v6e) and raise
    # vmem_limit_bytes above the scoped default when scaling BT/S.
    enc_hid = jnp.tanh(enc_l + hid_l[:, None, :])            # (BT, S, WH)
    v = jnp.sum(enc_hid, axis=-1)                            # (BT, S)
    v = v - jnp.max(v, axis=-1, keepdims=True)
    ev = jnp.exp(v)
    atten = ev / jnp.sum(ev, axis=-1, keepdims=True)         # (BT, S)

    # selectedOutput = bmm(atten.unsqueeze(1), encoderOutputs) -> (BT, E)
    selected = jnp.sum(atten[:, :, None] * enc, axis=1)

    # -------- fused single-timestep bidirectional LSTM --------
    # Two MXU weight fills instead of sixteen tiny N=16 dots (three fills in
    # v2): [feat | h] arrive pre-concatenated from the wrapper and hit one
    # fused (Dfeat+2H, 8H) weight (rows 0:Dfeat = input weight feat part,
    # rows Dfeat: = block-structured recurrent weight so h_fwd only touches
    # fwd gate columns and h_bwd only bwd columns); only `selected`
    # (computed in-kernel) needs its own (E, 8H) dot.
    # Gate column layout: [i | f | g | o], each 2H wide = [fwd H | bwd H];
    # 8H == 128 lanes for H=16, so the MXU lane dimension is exactly filled.
    # TODO(synk): on v6e/v7x an in-kernel lane concat of `selected` into the
    # fused operand (K=144, still one fill on the 256-deep MXU) would drop the
    # gate path to a single fill; and for production Din/V cast dot operands
    # to bf16 (keep f32 accumulation via preferred_element_type and f32
    # elementwise math).
    gates = (jnp.dot(xfh_ref[...], w_gfh_ref[...],
                     preferred_element_type=jnp.float32)
             + jnp.dot(selected, w_gs_ref[...],
                       preferred_element_type=jnp.float32)
             + b_g_ref[...])                                  # (BT, 8H)

    i_all = jax.nn.sigmoid(gates[:, 0 * TH:1 * TH])           # (BT, 2H)
    f_all = jax.nn.sigmoid(gates[:, 1 * TH:2 * TH])
    g_all = jnp.tanh(gates[:, 2 * TH:3 * TH])
    o_all = jax.nn.sigmoid(gates[:, 3 * TH:4 * TH])

    c_new = f_all * c_cat + i_all * g_all                     # (BT, 2H)
    h_new = o_all * jnp.tanh(c_new)                           # (BT, 2H) == [h_fwd | h_bwd]

    # output projection into a lane-dense (multiple-of-128) padded vocab slab
    logits_ref[...] = (jnp.dot(h_new, w_out_ref[...],
                               preferred_element_type=jnp.float32) + b_out_ref[...])
    # single merged state slab: one output DMA stream / one store instead of
    # two separate 32-lane masked stores; split back into h/c outside.
    hc_ref[...] = jnp.concatenate([h_new, c_new], axis=-1)    # (BT, 4H)


def pack_params(p, *, H, E):
    """Repack natural (per-direction, per-gate) params into fused MXU layouts."""
    w_ih = p['w_ih']                       # (2, 4, Din, H), gate order i, f, g, o
    w_hh = p['w_hh']                       # (2, 4, H, H)
    b_g = p['b_gate']                      # (2, 4, 1, H)  (b_ih + b_hh combined)
    Din = w_ih.shape[2]
    Dfeat = Din - E
    TH = 2 * H                             # per-gate fused width [fwd | bwd]
    G = 4 * TH                             # 8H total fused gate width (=128 for H=16)

    # Column layout gate-major, direction-minor:
    #   [i_f, i_b, f_f, f_b, g_f, g_b, o_f, o_b], each block H wide.
    w_ih_all = jnp.transpose(w_ih, (2, 1, 0, 3)).reshape(Din, G)   # (Din, 8H)
    b_all = jnp.transpose(b_g, (2, 1, 0, 3)).reshape(1, G)         # (1, 8H)

    # Block-structured recurrent weight: rows 0:H (h_fwd) hit only fwd columns,
    # rows H:2H (h_bwd) hit only bwd columns (zeros elsewhere).
    w_hh_np = np.asarray(w_hh)
    w_hh_bd = np.zeros((TH, G), np.float32)
    for d in range(2):
        for g in range(4):
            w_hh_bd[d * H:(d + 1) * H, g * TH + d * H: g * TH + (d + 1) * H] = w_hh_np[d, g]

    # Fused [feat | h] gate weight: rows 0:Dfeat = feat part of the LSTM input
    # weight, rows Dfeat:Dfeat+2H = block-diagonal recurrent weight.
    w_gate_fh = np.concatenate([np.asarray(w_ih_all[:Dfeat]), w_hh_bd], axis=0)

    # Lane-dense output: pad vocab to a multiple of 128 with zero weight/bias.
    V = p['w_out'].shape[1]
    Vp = max(128, ((V + 127) // 128) * 128)
    w_out_p = np.zeros((TH, Vp), np.float32)
    w_out_p[:, :V] = np.asarray(p['w_out'])
    b_out_p = np.zeros((1, Vp), np.float32)
    b_out_p[:, :V] = np.asarray(p['b_out'])

    return dict(
        w_enc=p['w_enc'],
        w_hid=p['w_hid'],
        b_hid_eff=p['b_hid'] + p['b_enc'],            # b_enc folded into b_hid
        w_gate_fh=jnp.asarray(w_gate_fh),             # (Dfeat+2H, 8H)
        w_gate_sel=jnp.asarray(w_ih_all[Dfeat:]),     # (E, 8H)
        b_gate_all=jnp.asarray(b_all),                # (1, 8H)
        w_out_p=jnp.asarray(w_out_p),                 # (2H, Vp)
        b_out_p=jnp.asarray(b_out_p),                 # (1, Vp)
        v_out=V,
    )


def decoder_forward(enc, feat, h0, c0, packed, *, batch_tile=None):
    """One decode step.  Returns (logits (B, V), h_new (2, B, H), c_new (2, B, H)).

    batch_tile=None -> single grid step over the whole batch (the kernel is
    fixed-overhead bound at small B: each extra grid step costs ~0.35 us plus
    a full set of MXU weight fills).  Pass a divisor of B only when the
    double-buffered (BT, S, E) enc tile no longer fits VMEM — re-derive per
    generation (64 MiB physical VMEM on v7x vs 128 MiB on v5e/v6e).

    TODO(synk): in an autoregressive decode loop, hoist the timestep loop into
    the kernel (extra "arbitrary" grid axis or an in-kernel loop with manual
    enc-page DMA), alias h/c state via input_output_aliases, and keep the
    packed weights resident in VMEM so they are not re-DMA'd and the kernel is
    not re-dispatched every step.
    """
    B, S, E = enc.shape
    H = h0.shape[-1]
    TH = 2 * H
    Vp = packed['w_out_p'].shape[1]
    V = packed['v_out']

    # Layout plumbing outside the kernel: state in (B, 2H) "[fwd | bwd]" form
    # and [feat | h] pre-concatenated for the fused gate matmul.
    h_cat = jnp.concatenate([h0[0], h0[1]], axis=-1)     # (B, 2H)
    c_cat = jnp.concatenate([c0[0], c0[1]], axis=-1)     # (B, 2H)
    x_fh = jnp.concatenate([feat, h_cat], axis=-1)       # (B, Dfeat+2H)

    BT = B if (batch_tile is None or B % batch_tile != 0) else batch_tile
    n_tiles = B // BT

    row3 = lambda i: (i, 0, 0)
    row2 = lambda i: (i, 0)
    full = lambda i: (0, 0)

    in_specs = [
        pl.BlockSpec((BT, S, E), row3),                  # enc
        pl.BlockSpec((BT, x_fh.shape[1]), row2),         # [feat | h]
        pl.BlockSpec((BT, TH), row2),                    # c_cat
        pl.BlockSpec(packed['w_enc'].shape, full),
        pl.BlockSpec(packed['w_hid'].shape, full),
        pl.BlockSpec(packed['b_hid_eff'].shape, full),
        pl.BlockSpec(packed['w_gate_fh'].shape, full),
        pl.BlockSpec(packed['w_gate_sel'].shape, full),
        pl.BlockSpec(packed['b_gate_all'].shape, full),
        pl.BlockSpec(packed['w_out_p'].shape, full),
        pl.BlockSpec(packed['b_out_p'].shape, full),
    ]
    out_specs = (
        pl.BlockSpec((BT, Vp), row2),                    # padded logits (lane-dense)
        pl.BlockSpec((BT, 2 * TH), row2),                # merged [h | c] state slab
    )
    out_shape = (
        jax.ShapeDtypeStruct((B, Vp), jnp.float32),
        jax.ShapeDtypeStruct((B, 2 * TH), jnp.float32),
    )

    logits_p, hc = pl.pallas_call(
        decoder_kernel,
        grid=(n_tiles,),
        in_specs=in_specs,
        out_specs=out_specs,
        out_shape=out_shape,
        compiler_params=pltpu.CompilerParams(
            # Only shard batch tiles across TensorCores (v7x megacore) when the
            # grid actually has several tiles; a 1-step grid stays "arbitrary"
            # (megacore-splitting a single us-scale tile costs more than it saves).
            dimension_semantics=(("parallel",) if n_tiles > 1 else ("arbitrary",)),
        ),
    )(enc, x_fh, c_cat,
      packed['w_enc'], packed['w_hid'], packed['b_hid_eff'],
      packed['w_gate_fh'], packed['w_gate_sel'], packed['b_gate_all'],
      packed['w_out_p'], packed['b_out_p'])

    # NOTE: downstream softmax/argmax must run on the stripped [:, :V] logits.
    logits = logits_p[:, :V]
    h_new_cat, c_new_cat = hc[:, :TH], hc[:, TH:]
    h_new = jnp.stack([h_new_cat[:, :H], h_new_cat[:, H:]], axis=0)   # (2, B, H)
    c_new = jnp.stack([c_new_cat[:, :H], c_new_cat[:, H:]], axis=0)   # (2, B, H)
    return logits, h_new, c_new


def reference_forward(enc, feat, h0, c0, p):
    """Pure-JAX reference mirroring the PyTorch forward semantics."""
    enc_l = enc @ p['w_enc'] + p['b_enc']
    hid_cat = jnp.concatenate([c0[0], c0[1]], axis=-1)
    hid_l = hid_cat @ p['w_hid'] + p['b_hid']
    enc_hid = jnp.tanh(enc_l + hid_l[:, None, :])
    atten = jax.nn.softmax(jnp.sum(enc_hid, axis=-1), axis=-1)
    selected = jnp.einsum('bs,bse->be', atten, enc)
    x_in = jnp.concatenate([feat, selected], axis=-1)
    hs, cs = [], []
    for d in range(2):
        g = [x_in @ p['w_ih'][d, gi] + h0[d] @ p['w_hh'][d, gi] + p['b_gate'][d, gi]
             for gi in range(4)]
        i_g = jax.nn.sigmoid(g[0]); f_g = jax.nn.sigmoid(g[1])
        g_g = jnp.tanh(g[2]); o_g = jax.nn.sigmoid(g[3])
        c_new = f_g * c0[d] + i_g * g_g
        hs.append(o_g * jnp.tanh(c_new)); cs.append(c_new)
    lstm_out = jnp.concatenate(hs, axis=-1)
    logits = lstm_out @ p['w_out'] + p['b_out']
    return logits, jnp.stack(hs), jnp.stack(cs)


if __name__ == "__main__":
    key = jax.random.PRNGKey(0)

    # small shapes consistent with the module
    B, S = 16, 8                    # batch, tokSeqLen (encoder output length)
    E = 32                          # encodedSize
    H = 16                          # hiddenSize
    WH = 2 * H                      # workingHiddenSize (numLayers=1, bidir)
    tokVocab, tokEmbD = 20, 16
    wordVocab, wordEmbD = 30, 16
    L = 4                           # subTokSeqLen
    typeVocab, typeEmbD = 10, 8
    lenVocab, lenEmbD = 6, 4
    V = 32                          # outVocabSize
    Din = tokEmbD + wordEmbD + E + L * (typeEmbD + lenEmbD)   # LSTM input size

    keys = jax.random.split(key, 20)

    def nrm(k, shape, scale=0.1):
        return (scale * jax.random.normal(k, shape)).astype(jnp.float32)

    params = {
        'w_enc':  nrm(keys[0], (E, WH)),
        'b_enc':  nrm(keys[1], (1, WH)),
        'w_hid':  nrm(keys[2], (WH, WH)),
        'b_hid':  nrm(keys[3], (1, WH)),
        'w_ih':   nrm(keys[4], (2, 4, Din, H)),    # per-direction, per-gate (i,f,g,o)
        'w_hh':   nrm(keys[5], (2, 4, H, H)),
        'b_gate': nrm(keys[6], (2, 4, 1, H)),      # b_ih + b_hh combined
        'w_out':  nrm(keys[7], (WH, V)),
        'b_out':  nrm(keys[8], (1, V)),
    }
    tok_emb = nrm(keys[9], (tokVocab, tokEmbD), 1.0)
    word_emb = nrm(keys[10], (wordVocab, wordEmbD), 1.0)     # preTrainedWordEmbs
    type_tables = nrm(keys[11], (L, typeVocab, typeEmbD), 1.0)
    len_tables = nrm(keys[12], (L, lenVocab, lenEmbD), 1.0)

    tokInd = jax.random.randint(keys[13], (B,), 0, tokVocab)
    wordInd = jax.random.randint(keys[14], (B,), 0, wordVocab)
    subTokTypes = jax.random.randint(keys[15], (B, L), 0, typeVocab)
    subTokLengths = jax.random.randint(keys[16], (B, L), 0, lenVocab)
    enc = nrm(keys[17], (B, S, E), 1.0)                      # encoderOutputs
    h0 = nrm(keys[18], (2, B, H), 1.0)                       # self.hidden[0]
    c0 = nrm(keys[19], (2, B, H), 1.0)                       # self.hidden[1]

    # glue: embedding gathers + concat, same order as the PyTorch module
    # (x2 list + x3 list + [tokEmbeds, wordEmbeds]); selectedOutput is appended
    # inside the kernel via the split gate weight.
    x2 = [type_tables[i][subTokTypes[:, i]] for i in range(L)]
    x3 = [len_tables[i][subTokLengths[:, i]] for i in range(L)]
    feat = jnp.concatenate(x2 + x3 + [tok_emb[tokInd], word_emb[wordInd]], axis=-1)
    assert feat.shape == (B, Din - E)

    packed = pack_params(params, H=H, E=E)
    logits, h_new, c_new = decoder_forward(enc, feat, h0, c0, packed)
    logits = jax.block_until_ready(logits)
    assert logits.shape == (B, V) and logits.dtype == jnp.float32

    ref_logits, ref_h, ref_c = reference_forward(enc, feat, h0, c0, params)
    # Tightened vs v2 (2e-2 -> 5e-3); kept above 1e-5 because f32 matmuls may
    # take a reduced-precision MXU pass in either the kernel or the XLA
    # reference.  Packing/layout bugs produce O(1) errors, which this catches.
    np.testing.assert_allclose(np.asarray(logits), np.asarray(ref_logits),
                               atol=5e-3, rtol=5e-3)
    np.testing.assert_allclose(np.asarray(h_new), np.asarray(ref_h),
                               atol=5e-3, rtol=5e-3)
    np.testing.assert_allclose(np.asarray(c_new), np.asarray(ref_c),
                               atol=5e-3, rtol=5e-3)

    print("KERNEL_OK")
</pallas_src>

<mosaic_0001>
module attributes {stable_mosaic.version = 11 : i64} {
  func.func @decoder_kernel(%arg0: i32, %arg1: memref<16x8x32xf32, #tpu.memory_space<vmem>>, %arg2: memref<16x112xf32, #tpu.memory_space<vmem>>, %arg3: memref<16x32xf32, #tpu.memory_space<vmem>>, %arg4: memref<32x32xf32, #tpu.memory_space<vmem>>, %arg5: memref<32x32xf32, #tpu.memory_space<vmem>>, %arg6: memref<1x32xf32, #tpu.memory_space<vmem>>, %arg7: memref<112x128xf32, #tpu.memory_space<vmem>>, %arg8: memref<32x128xf32, #tpu.memory_space<vmem>>, %arg9: memref<1x128xf32, #tpu.memory_space<vmem>>, %arg10: memref<32x128xf32, #tpu.memory_space<vmem>>, %arg11: memref<1x128xf32, #tpu.memory_space<vmem>>, %arg12: memref<16x128xf32, #tpu.memory_space<vmem>>, %arg13: memref<16x64xf32, #tpu.memory_space<vmem>>) attributes {dimension_semantics = [#tpu.dimension_semantics<arbitrary>], iteration_bounds = array<i64: 1>, scalar_prefetch = 0 : i64, scratch_operands = 0 : i64, tpu.core_type = #tpu.core_type<tc>, window_params = [{transform_indices = @transform_0, window_bounds = array<i64: 16, 8, 32>}, {transform_indices = @transform_1, window_bounds = array<i64: 16, 112>}, {transform_indices = @transform_2, window_bounds = array<i64: 16, 32>}, {pipeline_mode = #tpu.pipeline_mode<synchronous>, transform_indices = @transform_3, window_bounds = array<i64: 32, 32>}, {pipeline_mode = #tpu.pipeline_mode<synchronous>, transform_indices = @transform_4, window_bounds = array<i64: 32, 32>}, {pipeline_mode = #tpu.pipeline_mode<synchronous>, transform_indices = @transform_5, window_bounds = array<i64: 1, 32>}, {pipeline_mode = #tpu.pipeline_mode<synchronous>, transform_indices = @transform_6, window_bounds = array<i64: 112, 128>}, {pipeline_mode = #tpu.pipeline_mode<synchronous>, transform_indices = @transform_7, window_bounds = array<i64: 32, 128>}, {pipeline_mode = #tpu.pipeline_mode<synchronous>, transform_indices = @transform_8, window_bounds = array<i64: 1, 128>}, {pipeline_mode = #tpu.pipeline_mode<synchronous>, transform_indices = @transform_9, window_bounds = array<i64: 32, 128>}, {pipeline_mode = #tpu.pipeline_mode<synchronous>, transform_indices = @transform_10, window_bounds = array<i64: 1, 128>}, {transform_indices = @transform_11, window_bounds = array<i64: 16, 128>}, {transform_indices = @transform_12, window_bounds = array<i64: 16, 64>}]} {
    %c0 = arith.constant 0 : index
    %c0_0 = arith.constant 0 : index
    %c0_1 = arith.constant 0 : index
    %0 = vector.load %arg1[%c0, %c0_0, %c0_1] : memref<16x8x32xf32, #tpu.memory_space<vmem>>, vector<16x8x32xf32>
    %c0_2 = arith.constant 0 : index
    %c0_3 = arith.constant 0 : index
    %1 = vector.load %arg3[%c0_2, %c0_3] : memref<16x32xf32, #tpu.memory_space<vmem>>, vector<16x32xf32>
    %2 = vector.shape_cast %0 : vector<16x8x32xf32> to vector<128x32xf32>
    %c0_4 = arith.constant 0 : index
    %c0_5 = arith.constant 0 : index
    %3 = vector.load %arg4[%c0_4, %c0_5] : memref<32x32xf32, #tpu.memory_space<vmem>>, vector<32x32xf32>
    %cst = arith.constant dense<0.000000e+00> : vector<128x32xf32>
    %4 = tpu.matmul %2, %3, %cst {dimension_numbers = #tpu.dot_dimension_numbers<[1], [0], [0], [1], [0, 0, 1, 1], [], []>} : vector<128x32xf32>, vector<32x32xf32>, vector<128x32xf32> -> vector<128x32xf32>
    %5 = vector.shape_cast %4 : vector<128x32xf32> to vector<16x8x32xf32>
    %c0_6 = arith.constant 0 : index
    %c0_7 = arith.constant 0 : index
    %6 = vector.load %arg5[%c0_6, %c0_7] : memref<32x32xf32, #tpu.memory_space<vmem>>, vector<32x32xf32>
    %cst_8 = arith.constant dense<0.000000e+00> : vector<16x32xf32>
    %7 = tpu.matmul %1, %6, %cst_8 {dimension_numbers = #tpu.dot_dimension_numbers<[1], [0], [0], [1], [0, 0, 1, 1], [], []>} : vector<16x32xf32>, vector<32x32xf32>, vector<16x32xf32> -> vector<16x32xf32>
    %c0_9 = arith.constant 0 : index
    %c0_10 = arith.constant 0 : index
    %8 = vector.load %arg6[%c0_9, %c0_10] : memref<1x32xf32, #tpu.memory_space<vmem>>, vector<1x32xf32>
    %9 = vector.broadcast %8 : vector<1x32xf32> to vector<16x32xf32>
    %10 = arith.addf %7, %9 : vector<16x32xf32>
    %11 = vector.shape_cast %10 : vector<16x32xf32> to vector<16x1x32xf32>
    %12 = vector.broadcast %11 : vector<16x1x32xf32> to vector<16x8x32xf32>
    %13 = arith.addf %5, %12 : vector<16x8x32xf32>
    %14 = math.tanh %13 : vector<16x8x32xf32>
    %cst_11 = arith.constant dense<0.000000e+00> : vector<16x8xf32>
    %15 = vector.multi_reduction <add>, %14, %cst_11 [2] : vector<16x8x32xf32> to vector<16x8xf32>
    %cst_12 = arith.constant dense<0xFF800000> : vector<16xf32>
    %16 = vector.multi_reduction <maximumf>, %15, %cst_12 [1] : vector<16x8xf32> to vector<16xf32>
    %17 = vector.shape_cast %16 : vector<16xf32> to vector<16x1xf32>
    %18 = vector.broadcast %17 : vector<16x1xf32> to vector<16x8xf32>
    %19 = arith.subf %15, %18 : vector<16x8xf32>
    %20 = math.exp %19 : vector<16x8xf32>
    %cst_13 = arith.constant dense<0.000000e+00> : vector<16xf32>
    %21 = vector.multi_reduction <add>, %20, %cst_13 [1] : vector<16x8xf32> to vector<16xf32>
    %22 = vector.shape_cast %21 : vector<16xf32> to vector<16x1xf32>
    %23 = vector.broadcast %22 : vector<16x1xf32> to vector<16x8xf32>
    %24 = arith.divf %20, %23 : vector<16x8xf32>
    %25 = vector.shape_cast %24 : vector<16x8xf32> to vector<16x8x1xf32>
    %26 = vector.broadcast %25 : vector<16x8x1xf32> to vector<16x8x32xf32>
    %27 = arith.mulf %26, %0 : vector<16x8x32xf32>
    %cst_14 = arith.constant dense<0.000000e+00> : vector<16x32xf32>
    %28 = vector.multi_reduction <add>, %27, %cst_14 [1] : vector<16x8x32xf32> to vector<16x32xf32>
    %c0_15 = arith.constant 0 : index
    %c0_16 = arith.constant 0 : index
    %29 = vector.load %arg2[%c0_15, %c0_16] : memref<16x112xf32, #tpu.memory_space<vmem>>, vector<16x112xf32>
    %c0_17 = arith.constant 0 : index
    %c0_18 = arith.constant 0 : index
    %30 = vector.load %arg7[%c0_17, %c0_18] : memref<112x128xf32, #tpu.memory_space<vmem>>, vector<112x128xf32>
    %cst_19 = arith.constant dense<0.000000e+00> : vector<16x128xf32>
    %31 = tpu.matmul %29, %30, %cst_19 {dimension_numbers = #tpu.dot_dimension_numbers<[1], [0], [0], [1], [0, 0, 1, 1], [], []>} : vector<16x112xf32>, vector<112x128xf32>, vector<16x128xf32> -> vector<16x128xf32>
    %c0_20 = arith.constant 0 : index
    %c0_21 = arith.constant 0 : index
    %32 = vector.load %arg8[%c0_20, %c0_21] : memref<32x128xf32, #tpu.memory_space<vmem>>, vector<32x128xf32>
    %cst_22 = arith.constant dense<0.000000e+00> : vector<16x128xf32>
    %33 = tpu.matmul %28, %32, %cst_22 {dimension_numbers = #tpu.dot_dimension_numbers<[1], [0], [0], [1], [0, 0, 1, 1], [], []>} : vector<16x32xf32>, vector<32x128xf32>, vector<16x128xf32> -> vector<16x128xf32>
    %34 = arith.addf %31, %33 : vector<16x128xf32>
    %c0_23 = arith.constant 0 : index
    %c0_24 = arith.constant 0 : index
    %35 = vector.load %arg9[%c0_23, %c0_24] : memref<1x128xf32, #tpu.memory_space<vmem>>, vector<1x128xf32>
    %36 = vector.broadcast %35 : vector<1x128xf32> to vector<16x128xf32>
    %37 = arith.addf %34, %36 : vector<16x128xf32>
    %38 = vector.extract_strided_slice %37 {offsets = [0, 0], sizes = [16, 32], strides = [1, 1]} : vector<16x128xf32> to vector<16x32xf32>
    %39 = arith.negf %38 : vector<16x32xf32>
    %40 = math.exp %39 : vector<16x32xf32>
    %cst_25 = arith.constant 1.000000e+00 : f32
    %41 = vector.broadcast %cst_25 : f32 to vector<16x32xf32>
    %42 = arith.addf %41, %40 : vector<16x32xf32>
    %43 = arith.divf %41, %42 : vector<16x32xf32>
    %44 = vector.extract_strided_slice %37 {offsets = [0, 32], sizes = [16, 32], strides = [1, 1]} : vector<16x128xf32> to vector<16x32xf32>
    %45 = arith.negf %44 : vector<16x32xf32>
    %46 = math.exp %45 : vector<16x32xf32>
    %cst_26 = arith.constant 1.000000e+00 : f32
    %47 = vector.broadcast %cst_26 : f32 to vector<16x32xf32>
    %48 = arith.addf %47, %46 : vector<16x32xf32>
    %49 = arith.divf %47, %48 : vector<16x32xf32>
    %50 = vector.extract_strided_slice %37 {offsets = [0, 64], sizes = [16, 32], strides = [1, 1]} : vector<16x128xf32> to vector<16x32xf32>
    %51 = math.tanh %50 : vector<16x32xf32>
    %52 = vector.extract_strided_slice %37 {offsets = [0, 96], sizes = [16, 32], strides = [1, 1]} : vector<16x128xf32> to vector<16x32xf32>
    %53 = arith.negf %52 : vector<16x32xf32>
    %54 = math.exp %53 : vector<16x32xf32>
    %cst_27 = arith.constant 1.000000e+00 : f32
    %55 = vector.broadcast %cst_27 : f32 to vector<16x32xf32>
    %56 = arith.addf %55, %54 : vector<16x32xf32>
    %57 = arith.divf %55, %56 : vector<16x32xf32>
    %58 = arith.mulf %49, %1 : vector<16x32xf32>
    %59 = arith.mulf %43, %51 : vector<16x32xf32>
    %60 = arith.addf %58, %59 : vector<16x32xf32>
    %61 = math.tanh %60 : vector<16x32xf32>
    %62 = arith.mulf %57, %61 : vector<16x32xf32>
    %c0_28 = arith.constant 0 : index
    %c0_29 = arith.constant 0 : index
    %63 = vector.load %arg10[%c0_28, %c0_29] : memref<32x128xf32, #tpu.memory_space<vmem>>, vector<32x128xf32>
    %cst_30 = arith.constant dense<0.000000e+00> : vector<16x128xf32>
    %64 = tpu.matmul %62, %63, %cst_30 {dimension_numbers = #tpu.dot_dimension_numbers<[1], [0], [0], [1], [0, 0, 1, 1], [], []>} : vector<16x32xf32>, vector<32x128xf32>, vector<16x128xf32> -> vector<16x128xf32>
    %c0_31 = arith.constant 0 : index
    %c0_32 = arith.constant 0 : index
    %65 = vector.load %arg11[%c0_31, %c0_32] : memref<1x128xf32, #tpu.memory_space<vmem>>, vector<1x128xf32>
    %66 = vector.broadcast %65 : vector<1x128xf32> to vector<16x128xf32>
    %67 = arith.addf %64, %66 : vector<16x128xf32>
    %c0_33 = arith.constant 0 : index
    %c0_34 = arith.constant 0 : index
    %68 = vector.load %arg12[%c0_33, %c0_34] : memref<16x128xf32, #tpu.memory_space<vmem>>, vector<16x128xf32>
    tpu.vector_store %arg12[%c0_33, %c0_34], %67 {strides = array<i32>} : memref<16x128xf32, #tpu.memory_space<vmem>>, vector<16x128xf32>,
    %69 = tpu.concatenate %62, %60 in 1 : vector<16x32xf32>, vector<16x32xf32> -> vector<16x64xf32>
    %c0_35 = arith.constant 0 : index
    %c0_36 = arith.constant 0 : index
    %70 = vector.load %arg13[%c0_35, %c0_36] : memref<16x64xf32, #tpu.memory_space<vmem>>, vector<16x64xf32>
    tpu.vector_store %arg13[%c0_35, %c0_36], %69 {strides = array<i32>} : memref<16x64xf32, #tpu.memory_space<vmem>>, vector<16x64xf32>,
    return
  }
  func.func @transform_0(%arg0: i32) -> (i32, i32, i32) {
    %c0_i32 = arith.constant 0 : i32
    %c0_i32_0 = arith.constant 0 : i32
    %c0_i32_1 = arith.constant 0 : i32
    return %arg0, %c0_i32, %c0_i32_0 : i32, i32, i32
  }
  func.func @transform_1(%arg0: i32) -> (i32, i32) {
    %c0_i32 = arith.constant 0 : i32
    %c0_i32_0 = arith.constant 0 : i32
    return %arg0, %c0_i32 : i32, i32
  }
  func.func @transform_2(%arg0: i32) -> (i32, i32) {
    %c0_i32 = arith.constant 0 : i32
    %c0_i32_0 = arith.constant 0 : i32
    return %arg0, %c0_i32 : i32, i32
  }
  func.func @transform_3(%arg0: i32) -> (i32, i32) {
    %c0_i32 = arith.constant 0 : i32
    %c0_i32_0 = arith.constant 0 : i32
    %c0_i32_1 = arith.constant 0 : i32
    return %c0_i32, %c0_i32_0 : i32, i32
  }
  func.func @transform_4(%arg0: i32) -> (i32, i32) {
    %c0_i32 = arith.constant 0 : i32
    %c0_i32_0 = arith.constant 0 : i32
    %c0_i32_1 = arith.constant 0 : i32
    return %c0_i32, %c0_i32_0 : i32, i32
  }
  func.func @transform_5(%arg0: i32) -> (i32, i32) {
    %c0_i32 = arith.constant 0 : i32
    %c0_i32_0 = arith.constant 0 : i32
    %c0_i32_1 = arith.constant 0 : i32
    return %c0_i32, %c0_i32_0 : i32, i32
  }
  func.func @transform_6(%arg0: i32) -> (i32, i32) {
    %c0_i32 = arith.constant 0 : i32
    %c0_i32_0 = arith.constant 0 : i32
    %c0_i32_1 = arith.constant 0 : i32
    return %c0_i32, %c0_i32_0 : i32, i32
  }
  func.func @transform_7(%arg0: i32) -> (i32, i32) {
    %c0_i32 = arith.constant 0 : i32
    %c0_i32_0 = arith.constant 0 : i32
    %c0_i32_1 = arith.constant 0 : i32
    return %c0_i32, %c0_i32_0 : i32, i32
  }
  func.func @transform_8(%arg0: i32) -> (i32, i32) {
    %c0_i32 = arith.constant 0 : i32
    %c0_i32_0 = arith.constant 0 : i32
    %c0_i32_1 = arith.constant 0 : i32
    return %c0_i32, %c0_i32_0 : i32, i32
  }
  func.func @transform_9(%arg0: i32) -> (i32, i32) {
    %c0_i32 = arith.constant 0 : i32
    %c0_i32_0 = arith.constant 0 : i32
    %c0_i32_1 = arith.constant 0 : i32
    return %c0_i32, %c0_i32_0 : i32, i32
  }
  func.func @transform_10(%arg0: i32) -> (i32, i32) {
    %c0_i32 = arith.constant 0 : i32
    %c0_i32_0 = arith.constant 0 : i32
    %c0_i32_1 = arith.constant 0 : i32
    return %c0_i32, %c0_i32_0 : i32, i32
  }
  func.func @transform_11(%arg0: i32) -> (i32, i32) {
    %c0_i32 = arith.constant 0 : i32
    %c0_i32_0 = arith.constant 0 : i32
    return %arg0, %c0_i32 : i32, i32
  }
  func.func @transform_12(%arg0: i32) -> (i32, i32) {
    %c0_i32 = arith.constant 0 : i32
    %c0_i32_0 = arith.constant 0 : i32
    return %arg0, %c0_i32 : i32, i32
  }
}

</mosaic_0001>

<bundles_post_ra>
// kernel: tpu_custom_call.1
= control target key start
LH: loop header
LB: loop body
LE: loop exit
PB: predicated region body
PF: predicated region fallthrough
CT: control target
= control target key end

     0   :  { %18 = vsyncpa [#allocation3], 0  ;;  %s3071_s0 = inlined_call_operand.hbm [shape: f32[16,8,32], index: 0, kind: input, shape index: {}]   ;;  %s3072_s1 = inlined_call_operand.hbm [shape: f32[16,112], index: 1, kind: input, shape index: {}]   ;;  %s3073_s2 = inlined_call_operand.hbm [shape: f32[16,32], index: 2, kind: input, shape index: {}]   ;;  %s3074_s3 = inlined_call_operand.hbm [shape: f32[32,32], index: 3, kind: input, shape index: {}]   ;;  %s3075_s4 = inlined_call_operand.hbm [shape: f32[32,32], index: 4, kind: input, shape index: {}]   ;;  %s3076_s5 = inlined_call_operand.vmem [shape: f32[1,32], index: 5, kind: input, shape index: {}]   ;;  %s3077_s6 = inlined_call_operand.hbm [shape: f32[112,128], index: 6, kind: input, shape index: {}]   ;;  %s3078_s7 = inlined_call_operand.hbm [shape: f32[32,128], index: 7, kind: input, shape index: {}]   ;;  %s3079_s8 = inlined_call_operand.vmem [shape: f32[1,128], index: 8, kind: input, shape index: {}]   ;;  %s3080_s9 = inlined_call_operand.vmem [shape: f32[32,128], index: 9, kind: input, shape index: {}]   ;;  %s3081_s10 = inlined_call_operand.vmem [shape: f32[1,128], index: 10, kind: input, shape index: {}]   ;;  %s3082_s11 = inlined_call_operand.hbm [shape: f32[16,128], index: 11, kind: output, shape index: {0}]   ;;  %s3083_s12 = inlined_call_operand.hbm [shape: f32[16,64], index: 12, kind: output, shape index: {1}]  }
   0x1   :  { %19 = vsyncpa [#allocation6], 0 }
   0x2   :  { %20 = vsyncpa [#allocation9], 0 }
   0x3   :  { %21 = vsyncpa [#allocation12], 0 }
   0x4   :  { %22 = vsyncpa [#allocation4], 0 }
   0x5   :  { %23 = vsyncpa [#allocation16], 0  ;;  %s2426_s21 = smov [#allocation5]   ;;  %s2427_s23 = smov [#allocation8]  }
   0x6   :  { %s41_s22 = sshll.u32 %s2426_s21, 4  ;;  %s65_s24 = sshll.u32 %s2427_s23, 4  ;;  %s42_s22 = int_to_ptr.vmem [resolvable:$true] %s41_s22  ;;  %s2506_s24 = int_to_ptr.vmem [resolvable:$true] %s65_s24 }
   0x7   :  { %s2216_s27 = scalar_lea.hbm %s3072_s1, 256 }
   0x8   :  { %p2217_p0 = scmp.ne.s32.totalorder %s3072_s1, %s2216_s27  ;;  %p2220_p1 = scmp.lt.u32.totalorder %s2216_s27, %s3072_s1 }
   0xa   :  { %p2222_p2 = pnand %p2220_p1, %p2217_p0 }
   0xc   :  { %2225 = shalt.err (!%p2222_p2)
}
   0xd   :  { %s2226_s14 = scalar_lea.vmem %s42_s22, 256  ;;  %p2231_p4 = scmp.lt.s32.totalorder %s42_s22, %s42_s22 }
   0xe   :  { %p2227_p3 = scmp.ne.s32.totalorder %s42_s22, %s2226_s14  ;;  %p2232_p5 = scmp.lt.s32.totalorder %s2226_s14, %s2226_s14 }
  0x10   :  { %p2233_p6 = por %p2232_p5, %p2231_p4 }
  0x12   :  { %p2234_p7 = pnand %p2233_p6, %p2227_p3 }
  0x14   :  { %2237 = shalt.err (!%p2234_p7)
}
  0x15   :  { %s2428_s15 = smov 128   ;;  %s2429_s16 = smov 8  }
  0x16   :  { %47 = dma.hbm_to_vmem [thread:$0]  %s3072_s1, 256, %s42_s22, [#allocation6], %s2428_s15, %s2428_s15, %s2429_s16  }
  0x17   :  { %s2238_s21 = scalar_lea.hbm %s3074_s3, 512 }
  0x18   :  { %p2239_p8 = scmp.ne.s32.totalorder %s3074_s3, %s2238_s21  ;;  %p2242_p9 = scmp.lt.u32.totalorder %s2238_s21, %s3074_s3 }
  0x1a   :  { %p2244_p10 = pnand %p2242_p9, %p2239_p8 }
  0x1c   :  { %2247 = shalt.err (!%p2244_p10)
}
  0x1d   :  { %s2248_s28 = scalar_lea.vmem %s2506_s24, 512  ;;  %p2253_p12 = scmp.lt.s32.totalorder %s2506_s24, %s2506_s24 }
  0x1e   :  { %p2249_p11 = scmp.ne.s32.totalorder %s2506_s24, %s2248_s28  ;;  %p2254_p13 = scmp.lt.s32.totalorder %s2248_s28, %s2248_s28 }
  0x20   :  { %p2255_p0 = por %p2254_p13, %p2253_p12 }
  0x22   :  { %p2256_p1 = pnand %p2255_p0, %p2249_p11 }
  0x24   :  { %2259 = shalt.err (!%p2256_p1)
}
  0x25   :  { %71 = dma.hbm_to_vmem [thread:$0]  %s3074_s3, 512, %s2506_s24, [#allocation9], %s2428_s15, %s2428_s15, %s2429_s16  }
  0x26   :  { %s2430_s29 = smov [#allocation11]   ;;  %s2431_s13 = smov [#allocation2]  }
  0x27   :  { %s91_s30 = sshll.u32 %s2430_s29, 4  ;;  %s29_s14 = sshll.u32 %s2431_s13, 4  ;;  %s92_s30 = int_to_ptr.vmem [resolvable:$true] %s91_s30  ;;  %s2543_s14 = int_to_ptr.vmem [resolvable:$true] %s29_s14 }
  0x28   :  { %s2260_s19 = scalar_lea.hbm %s3077_s6, 1792 }
  0x29   :  { %p2261_p2 = scmp.ne.s32.totalorder %s3077_s6, %s2260_s19  ;;  %p2264_p3 = scmp.lt.u32.totalorder %s2260_s19, %s3077_s6 }
  0x2b   :  { %p2266_p4 = pnand %p2264_p3, %p2261_p2 }
  0x2d   :  { %2269 = shalt.err (!%p2266_p4)
}
  0x2e   :  { %s2270_s3 = scalar_lea.vmem %s92_s30, 1792  ;;  %p2275_p6 = scmp.lt.s32.totalorder %s92_s30, %s92_s30 }
  0x2f   :  { %p2271_p5 = scmp.ne.s32.totalorder %s92_s30, %s2270_s3  ;;  %p2276_p7 = scmp.lt.s32.totalorder %s2270_s3, %s2270_s3 }
  0x31   :  { %p2277_p8 = por %p2276_p7, %p2275_p6 }
  0x33   :  { %p2278_p9 = pnand %p2277_p8, %p2271_p5 }
  0x35   :  { %2281 = shalt.err (!%p2278_p9)
}
  0x36   :  { %97 = dma.hbm_to_vmem [thread:$0]  %s3077_s6, 1792, %s92_s30, [#allocation12], %s2428_s15, %s2428_s15, %s2429_s16  }
  0x37   :  { %s2282_s1 = scalar_lea.hbm %s3071_s0, 2048 }
  0x38   :  { %p2283_p10 = scmp.ne.s32.totalorder %s3071_s0, %s2282_s1  ;;  %p2286_p11 = scmp.lt.u32.totalorder %s2282_s1, %s3071_s0 }
  0x3a   :  { %p2288_p12 = pnand %p2286_p11, %p2283_p10 }
  0x3c   :  { %2291 = shalt.err (!%p2288_p12)
}
  0x3d   :  { %s2292_s18 = scalar_lea.vmem %s2543_s14, 2048  ;;  %p2297_p0 = scmp.lt.s32.totalorder %s2543_s14, %s2543_s14 }
  0x3e   :  { %p2293_p13 = scmp.ne.s32.totalorder %s2543_s14, %s2292_s18  ;;  %p2298_p1 = scmp.lt.s32.totalorder %s2292_s18, %s2292_s18 }
  0x40   :  { %p2299_p2 = por %p2298_p1, %p2297_p0 }
  0x42   :  { %p2300_p3 = pnand %p2299_p2, %p2293_p13 }
  0x44   :  { %2303 = shalt.err (!%p2300_p3)
}
  0x45   :  { %35 = dma.hbm_to_vmem [thread:$0]  %s3071_s0, 2048, %s2543_s14, [#allocation3], %s2428_s15, %s2428_s15, %s2429_s16  }
  0x46   :  { %s2432_s19 = smov [#allocation7]   ;;  %s2433_s21 = smov [#allocation10]  }
  0x47   :  { %s53_s20 = sshll.u32 %s2432_s19, 4  ;;  %s77_s23 = sshll.u32 %s2433_s21, 4  ;;  %s54_s20 = int_to_ptr.vmem [resolvable:$true] %s53_s20  ;;  %s2580_s23 = int_to_ptr.vmem [resolvable:$true] %s77_s23 }
  0x48   :  { %s2304_s24 = scalar_lea.hbm %s3073_s2, 256 }
  0x49   :  { %p2305_p4 = scmp.ne.s32.totalorder %s3073_s2, %s2304_s24  ;;  %p2308_p5 = scmp.lt.u32.totalorder %s2304_s24, %s3073_s2 }
  0x4b   :  { %p2310_p6 = pnand %p2308_p5, %p2305_p4 }
  0x4d   :  { %2313 = shalt.err (!%p2310_p6)
}
  0x4e   :  { %s2314_s0 = scalar_lea.vmem %s54_s20, 256  ;;  %p2319_p8 = scmp.lt.s32.totalorder %s54_s20, %s54_s20 }
  0x4f   :  { %p2315_p7 = scmp.ne.s32.totalorder %s54_s20, %s2314_s0  ;;  %p2320_p9 = scmp.lt.s32.totalorder %s2314_s0, %s2314_s0 }
  0x51   :  { %p2321_p10 = por %p2320_p9, %p2319_p8 }
  0x53   :  { %p2322_p11 = pnand %p2321_p10, %p2315_p7 }
  0x55   :  { %2325 = shalt.err (!%p2322_p11)
}
  0x56   :  { %59 = dma.hbm_to_vmem [thread:$0]  %s3073_s2, 256, %s54_s20, [#allocation6], %s2428_s15, %s2428_s15, %s2429_s16  }
  0x57   :  { %s2326_s17 = scalar_lea.hbm %s3075_s4, 512 }
  0x58   :  { %p2327_p12 = scmp.ne.s32.totalorder %s3075_s4, %s2326_s17  ;;  %p2330_p13 = scmp.lt.u32.totalorder %s2326_s17, %s3075_s4 }
  0x5a   :  { %p2332_p0 = pnand %p2330_p13, %p2327_p12 }
  0x5c   :  { %2335 = shalt.err (!%p2332_p0)
}
  0x5d   :  { %s2336_s21 = scalar_lea.vmem %s2580_s23, 512  ;;  %p2341_p2 = scmp.lt.s32.totalorder %s2580_s23, %s2580_s23 }
  0x5e   :  { %p2337_p1 = scmp.ne.s32.totalorder %s2580_s23, %s2336_s21  ;;  %p2342_p3 = scmp.lt.s32.totalorder %s2336_s21, %s2336_s21 }
  0x60   :  { %p2343_p4 = por %p2342_p3, %p2341_p2 }
  0x62   :  { %p2344_p5 = pnand %p2343_p4, %p2337_p1 }
  0x64   :  { %2347 = shalt.err (!%p2344_p5)
}
  0x65   :  { %83 = dma.hbm_to_vmem [thread:$0]  %s3075_s4, 512, %s2580_s23, [#allocation9], %s2428_s15, %s2428_s15, %s2429_s16  }
  0x66   :  { %s2434_s25 = smov [#allocation13]   ;;  %s2348_s27 = scalar_lea.hbm %s3078_s7, 512 }
  0x67   :  { %s103_s3 = sshll.u32 %s2434_s25, 4  ;;  %p2349_p6 = scmp.ne.s32.totalorder %s3078_s7, %s2348_s27  ;;  %s104_s3 = int_to_ptr.vmem [resolvable:$true] %s103_s3 }
  0x68   :  { %p2352_p7 = scmp.lt.u32.totalorder %s2348_s27, %s3078_s7 }
  0x6a   :  { %p2354_p8 = pnand %p2352_p7, %p2349_p6 }
  0x6c   :  { %2357 = shalt.err (!%p2354_p8)
}
  0x6d   :  { %s2358_s22 = scalar_lea.vmem %s104_s3, 512  ;;  %p2363_p10 = scmp.lt.s32.totalorder %s104_s3, %s104_s3 }
  0x6e   :  { %p2359_p9 = scmp.ne.s32.totalorder %s104_s3, %s2358_s22  ;;  %p2364_p11 = scmp.lt.s32.totalorder %s2358_s22, %s2358_s22 }
  0x70   :  { %p2365_p12 = por %p2364_p11, %p2363_p10 }
  0x72   :  { %p2366_p13 = pnand %p2365_p12, %p2359_p9 }
  0x74   :  { %2369 = shalt.err (!%p2366_p13)
}
  0x75   :  { %109 = dma.hbm_to_vmem [thread:$0]  %s3078_s7, 512, %s104_s3, [#allocation12], %s2428_s15, %s2428_s15, %s2429_s16  }
  0x76   :  { %2414 = dma.done.wait [#allocation3], 2048  }
  0x77   :  { %2415 = vsyncadd [#allocation3], 4294965248 }
  0x78   :  { %2416 = dma.done.wait [#allocation6], 512  }
  0x79   :  { %2417 = vsyncadd [#allocation6], 4294966784 }
  0x7a   :  { %2418 = dma.done.wait [#allocation9], 1024  }
  0x7b   :  { %2419 = vsyncadd [#allocation9], 4294966272 }
  0x7c   :  { %2420 = dma.done.wait [#allocation12], 2304  }
  0x7d   :  { %2421 = vsyncadd [#allocation12], 4294964992  ;;  %v155_v0 = vld [vmem:[#allocation8] sm:$0xff]  ;;  %v156_v1 = vld [vmem:[#allocation8 + $0x8] sm:$0xff]  ;;  %vm159_vm0 = vcmask 261120   ;;  %v451_v32 = vlaneseq  ;;  %vm787_vm1 = vcmask 1041409  }
  0x7e   :  { %v353_v2 = vld [vmem:[#allocation10] sm:$0xff]  ;;  %v2013_v3 = vpack.c.bf16 %v156_v1, %v155_v0  ;;  %v354_v4 = vld [vmem:[#allocation10 + $0x8] sm:$0xff]  ;;  %v157_v5 = vld [vmem:[#allocation8 + $0x10] sm:$0xff]  ;;  %v2435_v30 = vmov 1966171168   ;;  %vm789_vm2 = vcmask 1042434  }
  0x7f   :  { %v158_v6 = vld [vmem:[#allocation8 + $0x18] sm:$0xff]  ;;  %v2021_v7 = vpack.c.bf16 %v354_v4, %v353_v2  ;;  %v355_v9 = vld [vmem:[#allocation10 + $0x10] sm:$0xff]  ;;  %v137_v11 = vld [vmem:[#allocation2] sm:$0xff]  ;;  %v449_v31 = vunpack.c.l.s4 %v2435_v30  ;;  %v2669_v34 = vshrl.u32 %v451_v32, 7  ;;  %vm791_vm3 = vcmask 1043459   ;;  %s2437_s17 = smov 64  }
  0x80   :  { %v2017_v8 = vpack.c.bf16 %v158_v6, %v157_v5  ;;  %v356_v10 = vld [vmem:[#allocation10 + $0x18] sm:$0xff]  ;;  %2014 = vmatprep.subr.bf16.mxu0 %v2013_v3  ;;  %1925 = vmatprep.mubr.msk.f32.mxu0 %vm159_vm0, %v137_v11  ;;  %v153_v13 = vld [vmem:[#allocation7] sm:$0xff]  ;;  %v2634_v14 = vld [vmem:[#allocation2 + $0x8] sm:$0xff]  ;;  %vm793_vm4 = vcmask 1044484   ;;  %vm795_vm5 = vcmask 1045509   ;;  %vm797_vm6 = vcmask 1046534  }
  0x81   :  { %v2025_v12 = vpack.c.bf16 %v356_v10, %v355_v9  ;;  %2022 = vmatprep.subr.bf16.mxu1 %v2021_v7  ;;  %2016 = vmatpush3.bf16.msra.mxu0 %v2013_v3  ;;  %v154_v15 = vld [vmem:[#allocation7 + $0x8] sm:$0xff]  ;;  %v2636_v16 = vld [vmem:[#allocation2 + $0x10] sm:$0xff]  ;;  %v2645_v18 = vld [vmem:[#allocation2 + $0x20] sm:$0xff]  ;;  %v450_v33 = vunpack.c.0.s8 %v449_v31  ;;  %v2680_v48 = vsub.s32 0, %v2669_v34  ;;  %vm799_vm7 = vcmask 1047559   ;;  %s2438_s18 = smov 32  }
  0x82   :  { %2024 = vmatpush3.bf16.msra.mxu1 %v2021_v7  ;;  %2018 = vmatprep.subr.bf16.mxu0 %v2017_v8  ;;  %v2643_v17 = vld [vmem:[#allocation2 + $0x18] sm:$0xff]  ;;  %v2651_v19 = vld [vmem:[#allocation2 + $0x28] sm:$0xff]  ;;  %v2653_v20 = vld [vmem:[#allocation2 + $0x30] sm:$0xff]  ;;  %vm810_vm8 = vcmask 64512   ;;  %vm1548_vm9 = vcmask 916480   ;;  %vm1795_vm10 = vcmask 523264  }
  0x83   :  { %2026 = vmatprep.subr.bf16.mxu1 %v2025_v12  ;;  %1957 = vmatprep.mubr.msk.f32.mxu1 %vm159_vm0, %v153_v13  ;;  %v144_v21 = vld [vmem:[#allocation2 + $0x38] sm:$0xff]  ;;  %v145_v22 = vld [vmem:[#allocation2 + $0x40] sm:$0xff]  ;;  %v146_v23 = vld [vmem:[#allocation2 + $0x48] sm:$0xff]  ;;  %v2675_v36 = vsub.s32 %v450_v33, %v2669_v34 }
  0x84   :  { %v147_v24 = vld [vmem:[#allocation2 + $0x50] sm:$0xff]  ;;  %v148_v25 = vld [vmem:[#allocation2 + $0x58] sm:$0xff]  ;;  %v149_v26 = vld [vmem:[#allocation2 + $0x60] sm:$0xff] }
  0x85   :  { %2020 = vmatpush3.bf16.msra.mxu0 %v2017_v8  ;;  %v150_v27 = vld [vmem:[#allocation2 + $0x68] sm:$0xff]  ;;  %v151_v28 = vld [vmem:[#allocation2 + $0x70] sm:$0xff]  ;;  %v152_v29 = vld [vmem:[#allocation2 + $0x78] sm:$0xff] }
  0x86   :  { %2028 = vmatpush3.bf16.msra.mxu1 %v2025_v12  ;;  %v1850_v35 = vld [vmem:[%s3076_s5] ss:$0 sm:$0xff] }
  0x88   :  { %1926 = vmatmul.mubr.msk.f32.vlgmr.msra.gmra.mrb[0].mxu0 %vm159_vm0, %v2634_v14 }
  0x89   :  { %1958 = vmatmul.mubr.msk.f32.vlgmr.msra.gmra.mrb[0].mxu1 %vm159_vm0, %v154_v15  ;;  %1928 = vmatprep.mubr.msk.f32.mxu0 %vm159_vm0, %v2636_v16 }
  0x8c   :  { %1929 = vmatmul.mubr.msk.f32.gmra.mrb[2].mxu0 %vm159_vm0, %v2643_v17 }
  0x8d   :  { %1931 = vmatprep.mubr.msk.f32.mxu0 %vm159_vm0, %v2645_v18 }
  0x90   :  { %1932 = vmatmul.mubr.msk.f32.gmra.mrb[4].mxu0 %vm159_vm0, %v2651_v19 }
  0x91   :  { %1934 = vmatprep.mubr.msk.f32.mxu0 %vm159_vm0, %v2653_v20 }
  0x94   :  { %1935 = vmatmul.mubr.msk.f32.gmra.mrb[6].mxu0 %vm159_vm0, %v144_v21 }
  0x95   :  { %1937 = vmatprep.mubr.msk.f32.mxu0 %vm159_vm0, %v145_v22 }
  0x98   :  { %1938 = vmatmul.mubr.msk.f32.gmra.mrb[8].mxu0 %vm159_vm0, %v146_v23 }
  0x99   :  { %1940 = vmatprep.mubr.msk.f32.mxu0 %vm159_vm0, %v147_v24 }
  0x9c   :  { %1941 = vmatmul.mubr.msk.f32.gmra.mrb[10].mxu0 %vm159_vm0, %v148_v25 }
  0x9d   :  { %1943 = vmatprep.mubr.msk.f32.mxu0 %vm159_vm0, %v149_v26 }
  0xa0   :  { %1944 = vmatmul.mubr.msk.f32.gmra.mrb[12].mxu0 %vm159_vm0, %v150_v27 }
  0xa1   :  { %1946 = vmatprep.mubr.msk.f32.mxu0 %vm159_vm0, %v151_v28 }
  0xa4   :  { %1947 = vmatmul.mubr.msk.f32.gmra.mrb[14].mxu0 %vm159_vm0, %v152_v29 }
 0x15b   :  { %v1927_v37 = vpop.f32.mrb[0].mxu0 }
 0x15c   :  { %v1959_v38 = vpop.f32.mrb[0].mxu1  ;;  %v274_v39 = vpop.f32.mrb[1].mxu0 }
 0x15d   :  { %v442_v40 = vadd.f32 %v1959_v38, %v1850_v35  ;;  %v436_v41 = vpop.f32.mrb[1].mxu1 }
 0x15e   :  { %v437_v42 = vadd.f32 %v1850_v35, %v436_v41 }
 0x15f   :  { %v496_v43 = vcombine.high %v442_v40, %v442_v40  ;;  %v503_v44 = vrot.slane %v442_v40, %v2675_v36  ;;  %v1930_v45 = vpop.f32.mrb[2].mxu0 }
 0x160   :  { %v447_v46 = vcombine.high %v437_v42, %v437_v42  ;;  %v454_v47 = vrot.slane %v437_v42, %v2675_v36  ;;  %v284_v49 = vpop.f32.mrb[3].mxu0 }
 0x161   :  { %v511_v50 = vcombine.high %v503_v44, %v503_v44  ;;  %v519_v51 = vrot.slane %v503_v44, %v2675_v36  ;;  %v510_v55 = vrot.slane %v496_v43, %v2675_v36 }
 0x162   :  { %v461_v52 = vrot.slane %v447_v46, %v2675_v36  ;;  %v462_v53 = vcombine.high %v454_v47, %v454_v47  ;;  %v470_v54 = vrot.slane %v454_v47, %v2675_v36 }
 0x163   :  { %v1933_v56 = vpop.f32.mrb[4].mxu0  ;;  %v533_v63 = vrot.slane %v511_v50, %v2675_v36  ;;  %v580_v0 = vrot.slane %v519_v51, %v2680_v48  ;;  %v541_v1 = vcombine.high %v519_v51, %v519_v51  ;;  %v512_v10 = vcombine.high %v510_v55, %v510_v55 }
 0x164   :  { %v484_v57 = vrot.slane %v462_v53, %v2675_v36  ;;  %v548_v58 = vrot.slane %v470_v54, %v2680_v48  ;;  %v492_v59 = vcombine.high %v470_v54, %v470_v54  ;;  %v463_v60 = vcombine.high %v461_v52, %v461_v52  ;;  %v294_v61 = vpop.f32.mrb[5].mxu0 }
 0x165   :  { %v477_v62 = vrot.slane %v461_v52, %v2675_v36  ;;  %v584_v26 = vrot.slane %v533_v63, %v2680_v48  ;;  %v543_v27 = vcombine.high %v533_v63, %v533_v63  ;;  %v540_v40 = vrot.slane %v512_v10, %v2675_v36 }
 0x166   :  { %v552_v2 = vrot.slane %v484_v57, %v2680_v48  ;;  %v625_v3 = vadd.f32 %v548_v58, %v274_v39  ;;  %v494_v4 = vcombine.high %v484_v57, %v484_v57  ;;  %v556_v5 = vrot.slane %v492_v59, %v2680_v48 }
 0x167   :  { %v491_v6 = vrot.slane %v463_v60, %v2675_v36  ;;  %v564_v7 = vrot.slane %v477_v62, %v2680_v48  ;;  %v1936_v8 = vpop.f32.mrb[6].mxu0  ;;  %v493_v9 = vcombine.high %v477_v62, %v477_v62  ;;  %v592_v39 = vrot.slane %v543_v27, %v2680_v48 }
 0x168   :  { %v626_v11 = vadd.f32 %v1927_v37, %v552_v2  ;;  %2092 = vtanh.f32 %v625_v3  ;;  %v560_v12 = vrot.slane %v494_v4, %v2680_v48  ;;  %v627_v13 = vadd.f32 %v556_v5, %v284_v49  ;;  %v304_v15 = vpop.f32.mrb[7].mxu0 }
 0x169   :  { %v568_v21 = vrot.slane %v491_v6, %v2680_v48  ;;  %v629_v22 = vadd.f32 %v564_v7, %v294_v61  ;;  %v495_v23 = vcombine.high %v491_v6, %v491_v6  ;;  %v572_v24 = vrot.slane %v493_v9, %v2680_v48 }
 0x16a   :  { %2094 = vtanh.f32 %v626_v11  ;;  %v628_v25 = vadd.f32 %v1930_v45, %v560_v12  ;;  %v588_v42 = vrot.slane %v541_v1, %v2680_v48  ;;  %v526_v43 = vrot.slane %v510_v55, %v2675_v36 }
 0x16b   :  { %2096 = vtanh.f32 %v627_v13  ;;  %v630_v28 = vadd.f32 %v1933_v56, %v568_v21  ;;  %v576_v29 = vrot.slane %v495_v23, %v2680_v48  ;;  %v631_v30 = vadd.f32 %v572_v24, %v304_v15  ;;  %v1939_v31 = vpop.f32.mrb[8].mxu0 }
 0x16c   :  { %v634_v33 = vadd.f32 %v1939_v31, %v584_v26  ;;  %v314_v35 = vpop.f32.mrb[9].mxu0  ;;  %2098 = vtanh.f32 %v629_v22  ;;  %v600_v49 = vrot.slane %v540_v40, %v2680_v48  ;;  %v544_v50 = vcombine.high %v540_v40, %v540_v40 }
 0x16d   :  { %v632_v37 = vadd.f32 %v1936_v8, %v576_v29  ;;  %v633_v38 = vadd.f32 %v580_v0, %v314_v35  ;;  %2100 = vtanh.f32 %v628_v25  ;;  %v596_v53 = vrot.slane %v526_v43, %v2680_v48 }
 0x16e   :  { %2102 = vtanh.f32 %v634_v33  ;;  %v542_v54 = vcombine.high %v526_v43, %v526_v43  ;;  %v608_v60 = vrot.slane %v544_v50, %v2680_v48  ;;  %v722_v43 = vand.u32 127, %v451_v32 }
 0x16f   :  { %v1942_v41 = vpop.f32.mrb[10].mxu0 }
 0x170   :  { %v636_v44 = vadd.f32 %v1942_v41, %v592_v39  ;;  %v324_v45 = vpop.f32.mrb[11].mxu0  ;;  %v604_v63 = vrot.slane %v542_v54, %v2680_v48 }
 0x171   :  { %v635_v46 = vadd.f32 %v588_v42, %v324_v45 }
 0x172   :  { %v2093_v47 = vpop.eup %2092  ;;  %2104 = vtanh.f32 %v636_v44 }
 0x173   :  { %v657_v51 = vsel %vm159_vm0, %v2093_v47, 0.0  ;;  %v1945_v52 = vpop.f32.mrb[12].mxu0  ;;  %2106 = vtanh.f32 %v630_v28 }
 0x174   :  { %v2095_v56 = vpop.eup %2094  ;;  %658 = vadd.xlane.f32.xlu0 %v657_v51  ;;  %v638_v57 = vadd.f32 %v1945_v52, %v600_v49  ;;  %v334_v36 = vpop.f32.mrb[13].mxu0  ;;  %2108 = vtanh.f32 %v635_v46  ;;  %v2740_v46 = vsub.s32 %v722_v43, %v2669_v34 }
 0x175   :  { %v2097_v55 = vpop.eup %2096  ;;  %v637_v58 = vadd.f32 %v596_v53, %v334_v36  ;;  %v660_v61 = vsel %vm159_vm0, %v2095_v56, 0.0  ;;  %2110 = vtanh.f32 %v631_v30 }
 0x176   :  { %v663_v59 = vsel %vm159_vm0, %v2097_v55, 0.0  ;;  %v2099_v0 = vpop.eup %2098  ;;  %2112 = vtanh.f32 %v638_v57 }
 0x177   :  { %664 = vadd.xlane.f32.xlu1 %v663_v59  ;;  %v1948_v62 = vpop.f32.mrb[14].mxu0  ;;  %v2101_v4 = vpop.eup %2100  ;;  %v669_v5 = vsel %vm159_vm0, %v2099_v0, 0.0  ;;  %2114 = vtanh.f32 %v633_v38 }
 0x178   :  { %661 = vadd.xlane.f32.xlu0 %v660_v61  ;;  %v640_v1 = vadd.f32 %v1948_v62, %v608_v60  ;;  %v344_v2 = vpop.f32.mrb[15].mxu0  ;;  %v2103_v6 = vpop.eup %2102  ;;  %v666_v9 = vsel %vm159_vm0, %v2101_v4, 0.0  ;;  %2116 = vtanh.f32 %v637_v58 }
 0x179   :  { %v639_v3 = vadd.f32 %v604_v63, %v344_v2  ;;  %v684_v7 = vsel %vm159_vm0, %v2103_v6, 0.0  ;;  %2118 = vtanh.f32 %v632_v37 }
 0x17b   :  { %670 = vadd.xlane.f32.xlu1 %v669_v5  ;;  %2120 = vtanh.f32 %v639_v3 }
 0x17c   :  { %v2105_v8 = vpop.eup %2104  ;;  %685 = vadd.xlane.f32.xlu0 %v684_v7  ;;  %2122 = vtanh.f32 %v640_v1 }
 0x17d   :  { %v690_v10 = vsel %vm159_vm0, %v2105_v8, 0.0  ;;  %v2107_v11 = vpop.eup %2106 }
 0x17e   :  { %v2109_v12 = vpop.eup %2108  ;;  %v672_v13 = vsel %vm159_vm0, %v2107_v11, 0.0 }
 0x17f   :  { %667 = vadd.xlane.f32.xlu1 %v666_v9  ;;  %v2111_v15 = vpop.eup %2110  ;;  %v687_v21 = vsel %vm159_vm0, %v2109_v12, 0.0 }
 0x180   :  { %691 = vadd.xlane.f32.xlu0 %v690_v10  ;;  %v2113_v22 = vpop.eup %2112  ;;  %v675_v23 = vsel %vm159_vm0, %v2111_v15, 0.0 }
 0x181   :  { %v2115_v24 = vpop.eup %2114  ;;  %v696_v25 = vsel %vm159_vm0, %v2113_v22, 0.0 }
 0x182   :  { %v2117_v26 = vpop.eup %2116  ;;  %v681_v27 = vsel %vm159_vm0, %v2115_v24, 0.0 }
 0x183   :  { %673 = vadd.xlane.f32.xlu1 %v672_v13  ;;  %v2119_v28 = vpop.eup %2118  ;;  %v693_v29 = vsel %vm159_vm0, %v2117_v26, 0.0 }
 0x184   :  { %688 = vadd.xlane.f32.xlu0 %v687_v21  ;;  %v678_v31 = vsel %vm159_vm0, %v2119_v28, 0.0 }
 0x185   :  { %v2121_v30 = vpop.eup %2120 }
 0x186   :  { %v2123_v33 = vpop.eup %2122  ;;  %v699_v35 = vsel %vm159_vm0, %v2121_v30, 0.0  ;;  %v2803_v30 = vsub.s32 1, %v2669_v34 }
 0x187   :  { %676 = vadd.xlane.f32.xlu1 %v675_v23  ;;  %v702_v37 = vsel %vm159_vm0, %v2123_v33, 0.0  ;;  %v2809_v33 = vsub.s32 5, %v2669_v34 }
 0x188   :  { %697 = vadd.xlane.f32.xlu0 %v696_v25 }
 0x18b   :  { %682 = vadd.xlane.f32.xlu1 %v681_v27 }
 0x18c   :  { %694 = vadd.xlane.f32.xlu0 %v693_v29  ;;  %v2436_v29 = vmov 0  }
 0x18d   :  { %2091 = vset.pattern.permute.xlu1 %v2436_v29  ;;  %2090 = vset.pattern.permute.xlu0 %v2436_v29 }
 0x18f   :  { %679 = vadd.xlane.f32.xlu1 %v678_v31  ;;  %v2806_v31 = vsub.s32 2, %v2669_v34 }
 0x190   :  { %700 = vadd.xlane.f32.xlu0 %v699_v35  ;;  %v2812_v35 = vsub.s32 3, %v2669_v34 }
 0x193   :  { %703 = vadd.xlane.f32.xlu1 %v702_v37  ;;  %v2815_v37 = vsub.s32 6, %v2669_v34 }
 0x201   :  { %v2724_v38 = vpop.xlane.xlu0 %658 }
 0x202   :  { %v726_v51 = vrot.slane %v2724_v38, %v2740_v46 }
 0x204   :  { %v2726_v39 = vpop.xlane.xlu1 %664 }
 0x205   :  { %v2728_v40 = vpop.xlane.xlu0 %661  ;;  %v734_v54 = vrot.slane %v2726_v39, %v2740_v46 }
 0x206   :  { %v730_v49 = vrot.slane %v2728_v40, %v2740_v46 }
 0x208   :  { %v2730_v41 = vpop.xlane.xlu1 %670  ;;  %v788_v32 = vsel %vm787_vm1, %v730_v49, %v726_v51 }
 0x209   :  { %v2732_v42 = vpop.xlane.xlu0 %685  ;;  %v790_v57 = vsel %vm789_vm2, %v734_v54, %v788_v32  ;;  %v742_v61 = vrot.slane %v2730_v41, %v2740_v46 }
 0x20a   :  { %v762_v55 = vrot.slane %v2732_v42, %v2740_v46 }
 0x20c   :  { %v2735_v44 = vpop.xlane.xlu1 %667 }
 0x20d   :  { %v2737_v45 = vpop.xlane.xlu0 %691  ;;  %v738_v53 = vrot.slane %v2735_v44, %v2740_v46 }
 0x20e   :  { %v770_v1 = vrot.slane %v2737_v45, %v2740_v46 }
 0x20f   :  { %v792_v58 = vsel %vm791_vm3, %v738_v53, %v790_v57  ;;  %v2821_v53 = vsub.s32 4, %v2669_v34 }
 0x210   :  { %v2742_v47 = vpop.xlane.xlu1 %673  ;;  %v794_v6 = vsel %vm793_vm4, %v742_v61, %v792_v58 }
 0x211   :  { %v2746_v50 = vpop.xlane.xlu0 %688  ;;  %v746_v59 = vrot.slane %v2742_v47, %v2740_v46 }
 0x212   :  { %v766_v62 = vrot.slane %v2746_v50, %v2740_v46 }
 0x213   :  { %v796_v10 = vsel %vm795_vm5, %v746_v59, %v794_v6 }
 0x214   :  { %v2750_v52 = vpop.xlane.xlu1 %676 }
 0x215   :  { %v2757_v56 = vpop.xlane.xlu0 %697  ;;  %v750_v63 = vrot.slane %v2750_v52, %v2740_v46 }
 0x216   :  { %v778_v7 = vrot.slane %v2757_v56, %v2740_v46 }
 0x217   :  { %v798_v13 = vsel %vm797_vm6, %v750_v63, %v796_v10 }
 0x218   :  { %v2760_v36 = vpop.xlane.xlu1 %682 }
 0x219   :  { %v758_v60 = vrot.slane %v2760_v36, %v2740_v46  ;;  %v2775_v0 = vpop.xlane.xlu0 %694 }
 0x21a   :  { %v774_v3 = vrot.slane %v2775_v0, %v2740_v46 }
 0x21b   :  { %v801_v2 = vsel %vm787_vm1, %v762_v55, %v758_v60  ;;  %v2829_v60 = vsub.s32 7, %v2669_v34 }
 0x21c   :  { %v802_v4 = vsel %vm789_vm2, %v766_v62, %v801_v2  ;;  %v680_v5 = vpop.xlane.xlu1 %679 }
 0x21d   :  { %v803_v8 = vsel %vm791_vm3, %v770_v1, %v802_v4  ;;  %v754_v9 = vrot.slane %v680_v5, %v2740_v46  ;;  %v2790_v12 = vpop.xlane.xlu0 %700 }
 0x21e   :  { %v804_v11 = vsel %vm793_vm4, %v774_v3, %v803_v8  ;;  %v782_v15 = vrot.slane %v2790_v12, %v2740_v46 }
 0x21f   :  { %v800_v21 = vsel %vm799_vm7, %v754_v9, %v798_v13  ;;  %v805_v22 = vsel %vm795_vm5, %v778_v7, %v804_v11 }
 0x220   :  { %v704_v23 = vpop.xlane.xlu1 %703  ;;  %v811_v24 = vsel %vm810_vm8, %v800_v21, -inf  ;;  %v806_v26 = vsel %vm797_vm6, %v782_v15, %v805_v22 }
 0x221   :  { %v786_v25 = vrot.slane %v704_v23, %v2740_v46  ;;  %812 = vmax.xlane.f32.xlu0 %v811_v24 }
 0x223   :  { %v807_v27 = vsel %vm799_vm7, %v786_v25, %v806_v26 }
 0x224   :  { %v814_v28 = vsel %vm810_vm8, %v807_v27, -inf }
 0x225   :  { %815 = vmax.xlane.f32.xlu1 %v814_v28 }
 0x2ae   :  { %v813_v43 = vpop.xlane.xlu0 %812 }
 0x2af   :  { %v822_v49 = vrot.slane %v813_v43, %v2680_v48  ;;  %v826_v51 = vrot.slane %v813_v43, %v2803_v30  ;;  %v830_v32 = vrot.slane %v813_v43, %v2806_v31  ;;  %v842_v54 = vrot.slane %v813_v43, %v2809_v33 }
 0x2b0   :  { %v834_v57 = vrot.slane %v813_v43, %v2812_v35  ;;  %v846_v61 = vrot.slane %v813_v43, %v2815_v37  ;;  %v838_v2 = vrot.slane %v813_v43, %v2821_v53 }
 0x2b1   :  { %v899_v55 = vsub.f32 %v2724_v38, %v822_v49  ;;  %v900_v58 = vsub.f32 %v2728_v40, %v826_v51  ;;  %v901_v59 = vsub.f32 %v2726_v39, %v830_v32  ;;  %v904_v62 = vsub.f32 %v2742_v47, %v842_v54 }
 0x2b2   :  { %v902_v3 = vsub.f32 %v2735_v44, %v834_v57  ;;  %v850_v38 = vrot.slane %v813_v43, %v2829_v60  ;;  %v905_v40 = vsub.f32 %v2750_v52, %v846_v61  ;;  %v816_v34 = vpop.xlane.xlu1 %815  ;;  %v903_v6 = vsub.f32 %v2730_v41, %v838_v2 }
 0x2b3   :  { %v915_v63 = vmul.f32 1.442695, %v899_v55  ;;  %v917_v1 = vmul.f32 1.442695, %v900_v58  ;;  %v919_v4 = vmul.f32 1.442695, %v901_v59  ;;  %v854_v47 = vrot.slane %v816_v34, %v2680_v48 }
 0x2b4   :  { %v925_v39 = vmul.f32 1.442695, %v904_v62  ;;  %v921_v7 = vmul.f32 1.442695, %v902_v3  ;;  %v906_v8 = vsub.f32 %v680_v5, %v850_v38  ;;  %v927_v9 = vmul.f32 1.442695, %v905_v40 }
 0x2b5   :  { %2124 = vpow2.f32 %v915_v63  ;;  %v882_v44 = vrot.slane %v816_v34, %v2829_v60  ;;  %v923_v10 = vmul.f32 1.442695, %v903_v6  ;;  %v907_v11 = vsub.f32 %v2760_v36, %v854_v47 }
 0x2b6   :  { %2126 = vpow2.f32 %v917_v1  ;;  %v929_v52 = vmul.f32 1.442695, %v906_v8  ;;  %v858_v13 = vrot.slane %v816_v34, %v2803_v30  ;;  %v862_v22 = vrot.slane %v816_v34, %v2806_v31 }
 0x2b7   :  { %2128 = vpow2.f32 %v919_v4  ;;  %v914_v15 = vsub.f32 %v704_v23, %v882_v44  ;;  %v931_v5 = vmul.f32 1.442695, %v907_v11  ;;  %v866_v23 = vrot.slane %v816_v34, %v2812_v35 }
 0x2b8   :  { %2130 = vpow2.f32 %v925_v39  ;;  %v908_v36 = vsub.f32 %v2732_v42, %v858_v13  ;;  %v909_v27 = vsub.f32 %v2746_v50, %v862_v22  ;;  %v870_v42 = vrot.slane %v816_v34, %v2821_v53 }
 0x2b9   :  { %2132 = vpow2.f32 %v921_v7  ;;  %v945_v24 = vmul.f32 1.442695, %v914_v15  ;;  %v910_v49 = vsub.f32 %v2737_v45, %v866_v23  ;;  %v874_v50 = vrot.slane %v816_v34, %v2809_v33 }
 0x2ba   :  { %2134 = vpow2.f32 %v927_v9  ;;  %v933_v28 = vmul.f32 1.442695, %v908_v36  ;;  %v935_v51 = vmul.f32 1.442695, %v909_v27  ;;  %v911_v57 = vsub.f32 %v2775_v0, %v870_v42 }
 0x2bb   :  { %2136 = vpow2.f32 %v923_v10  ;;  %v937_v55 = vmul.f32 1.442695, %v910_v49  ;;  %v878_v45 = vrot.slane %v816_v34, %v2815_v37  ;;  %v912_v61 = vsub.f32 %v2757_v56, %v874_v50 }
 0x2bc   :  { %2138 = vpow2.f32 %v929_v52  ;;  %v939_v62 = vmul.f32 1.442695, %v911_v57 }
 0x2bd   :  { %2140 = vpow2.f32 %v931_v5  ;;  %v913_v0 = vsub.f32 %v2790_v12, %v878_v45  ;;  %v941_v1 = vmul.f32 1.442695, %v912_v61 }
 0x2be   :  { %2142 = vpow2.f32 %v945_v24 }
 0x2bf   :  { %v2842_v21 = vpop.eup %2124  ;;  %2144 = vpow2.f32 %v933_v28  ;;  %v943_v3 = vmul.f32 1.442695, %v913_v0 }
 0x2c0   :  { %v2844_v41 = vpop.eup %2126  ;;  %964 = vperm.xlu0 %2090, %v2842_v21   ;;  %2146 = vpow2.f32 %v935_v51 }
 0x2c1   :  { %967 = vperm.xlu1 %2091, %v2844_v41   ;;  %v2850_v25 = vpop.eup %2128  ;;  %2148 = vpow2.f32 %v937_v55 }
 0x2c2   :  { %v2852_v26 = vpop.eup %2130  ;;  %2150 = vpow2.f32 %v939_v62 }
 0x2c3   :  { %v2858_v29 = vpop.eup %2132  ;;  %2152 = vpow2.f32 %v941_v1 }
 0x2c4   :  { %979 = vperm.xlu0 %2090, %v2852_v26   ;;  %v2860_v43 = vpop.eup %2134  ;;  %2154 = vpow2.f32 %v943_v3 }
 0x2c5   :  { %970 = vperm.xlu1 %2091, %v2850_v25   ;;  %v2866_v32 = vpop.eup %2136 }
 0x2c6   :  { %v2868_v54 = vpop.eup %2138 }
 0x2c7   :  { %v2874_v58 = vpop.eup %2140 }
 0x2c8   :  { %982 = vperm.xlu0 %2090, %v2860_v43   ;;  %v2876_v59 = vpop.eup %2142 }
 0x2c9   :  { %973 = vperm.xlu1 %2091, %v2858_v29   ;;  %v2882_v63 = vpop.eup %2144 }
 0x2ca   :  { %v2886_v2 = vpop.eup %2146 }
 0x2cb   :  { %v2889_v4 = vpop.eup %2148 }
 0x2cc   :  { %985 = vperm.xlu0 %2090, %v2868_v54   ;;  %v2892_v56 = vpop.eup %2150 }
 0x2cd   :  { %976 = vperm.xlu1 %2091, %v2866_v32   ;;  %v2895_v38 = vpop.eup %2152 }
 0x2ce   :  { %v2898_v12 = vpop.eup %2154 }
 0x2d0   :  { %1009 = vperm.xlu0 %2090, %v2876_v59  }
 0x2d1   :  { %988 = vperm.xlu1 %2091, %v2874_v58  }
 0x2d5   :  { %991 = vperm.xlu1 %2091, %v2882_v63  }
 0x2d9   :  { %994 = vperm.xlu1 %2091, %v2886_v2  }
 0x2dd   :  { %997 = vperm.xlu1 %2091, %v2889_v4  }
 0x2e1   :  { %1000 = vperm.xlu1 %2091, %v2892_v56  }
 0x2e5   :  { %1003 = vperm.xlu1 %2091, %v2895_v38  }
 0x2e9   :  { %1006 = vperm.xlu1 %2091, %v2898_v12  }
 0x33f   :  { %v965_v40 = vpop.permute.xlu0 %964 }
 0x340   :  { %v968_v39 = vpop.permute.xlu1 %967  ;;  %v1014_v47 = vrot.slane %v965_v40, %v2740_v46 }
 0x341   :  { %v1018_v7 = vrot.slane %v968_v39, %v2740_v46 }
 0x343   :  { %v980_v6 = vpop.permute.xlu0 %979  ;;  %v1075_v11 = vsel %vm787_vm1, %v1018_v7, %v1014_v47 }
 0x344   :  { %v971_v34 = vpop.permute.xlu1 %970  ;;  %v1034_v22 = vrot.slane %v980_v6, %v2740_v46 }
 0x345   :  { %v1022_v44 = vrot.slane %v971_v34, %v2740_v46 }
 0x347   :  { %v983_v9 = vpop.permute.xlu0 %982  ;;  %v1076_v13 = vsel %vm789_vm2, %v1022_v44, %v1075_v11 }
 0x348   :  { %v974_v8 = vpop.permute.xlu1 %973  ;;  %v1038_v24 = vrot.slane %v983_v9, %v2740_v46 }
 0x349   :  { %v1026_v10 = vrot.slane %v974_v8, %v2740_v46 }
 0x34b   :  { %v986_v5 = vpop.permute.xlu0 %985  ;;  %v1077_v36 = vsel %vm791_vm3, %v1026_v10, %v1076_v13 }
 0x34c   :  { %v977_v52 = vpop.permute.xlu1 %976  ;;  %v1042_v27 = vrot.slane %v986_v5, %v2740_v46 }
 0x34d   :  { %v1030_v15 = vrot.slane %v977_v52, %v2740_v46 }
 0x34f   :  { %v1078_v23 = vsel %vm793_vm4, %v1030_v15, %v1077_v36  ;;  %v1010_v7 = vpop.permute.xlu0 %1009 }
 0x350   :  { %v989_v28 = vpop.permute.xlu1 %988  ;;  %v1079_v42 = vsel %vm795_vm5, %v1034_v22, %v1078_v23  ;;  %v1074_v11 = vrot.slane %v1010_v7, %v2740_v46 }
 0x351   :  { %v1080_v49 = vsel %vm797_vm6, %v1038_v24, %v1079_v42  ;;  %v1046_v1 = vrot.slane %v989_v28, %v2740_v46 }
 0x352   :  { %v1081_v51 = vsel %vm799_vm7, %v1042_v27, %v1080_v49 }
 0x353   :  { %v1091_v50 = vsel %vm810_vm8, %v1081_v51, 0.0 }
 0x354   :  { %v992_v57 = vpop.permute.xlu1 %991  ;;  %1092 = vadd.xlane.f32.xlu1 %v1091_v50 }
 0x355   :  { %v1050_v62 = vrot.slane %v992_v57, %v2740_v46 }
 0x357   :  { %v1082_v34 = vsel %vm787_vm1, %v1050_v62, %v1046_v1 }
 0x358   :  { %v995_v55 = vpop.permute.xlu1 %994 }
 0x359   :  { %v1054_v0 = vrot.slane %v995_v55, %v2740_v46 }
 0x35b   :  { %v1083_v47 = vsel %vm789_vm2, %v1054_v0, %v1082_v34 }
 0x35c   :  { %v998_v45 = vpop.permute.xlu1 %997 }
 0x35d   :  { %v1058_v3 = vrot.slane %v998_v45, %v2740_v46 }
 0x35f   :  { %v1084_v8 = vsel %vm791_vm3, %v1058_v3, %v1083_v47 }
 0x360   :  { %v1001_v61 = vpop.permute.xlu1 %1000 }
 0x361   :  { %v1062_v39 = vrot.slane %v1001_v61, %v2740_v46 }
 0x363   :  { %v1085_v44 = vsel %vm793_vm4, %v1062_v39, %v1084_v8 }
 0x364   :  { %v1004_v40 = vpop.permute.xlu1 %1003 }
 0x365   :  { %v1066_v6 = vrot.slane %v1004_v40, %v2740_v46 }
 0x367   :  { %v1086_v52 = vsel %vm795_vm5, %v1066_v6, %v1085_v44 }
 0x368   :  { %v1007_v9 = vpop.permute.xlu1 %1006 }
 0x369   :  { %v1070_v10 = vrot.slane %v1007_v9, %v2740_v46 }
 0x36b   :  { %v1087_v13 = vsel %vm797_vm6, %v1070_v10, %v1086_v52 }
 0x36c   :  { %v1088_v15 = vsel %vm799_vm7, %v1074_v11, %v1087_v13  ;;  %v1435_v13 = vld [vmem:[#allocation13] sm:$0xff] }
 0x36d   :  { %v1094_v5 = vsel %vm810_vm8, %v1088_v15, 0.0  ;;  %v1436_v15 = vld [vmem:[#allocation13 + $0x8] sm:$0xff] }
 0x36e   :  { %1095 = vadd.xlane.f32.xlu0 %v1094_v5  ;;  %v1437_v5 = vld [vmem:[#allocation13 + $0x10] sm:$0xff] }
 0x3e1   :  { %v1093_v22 = vpop.xlane.xlu1 %1092 }
 0x3e2   :  { %v1106_v36 = vrot.slane %v1093_v22, %v2803_v30  ;;  %v1102_v24 = vrot.slane %v1093_v22, %v2680_v48  ;;  %v1110_v23 = vrot.slane %v1093_v22, %v2806_v31  ;;  %v1114_v27 = vrot.slane %v1093_v22, %v2812_v35 }
 0x3e3   :  { %v1118_v46 = vrot.slane %v1093_v22, %v2821_v53  ;;  %v1122_v28 = vrot.slane %v1093_v22, %v2809_v33  ;;  %v1126_v50 = vrot.slane %v1093_v22, %v2815_v37  ;;  %v1130_v6 = vrot.slane %v1093_v22, %v2829_v60  ;;  %v1438_v22 = vld [vmem:[#allocation13 + $0x18] sm:$0xff] }
 0x3e4   :  { %2156 = vrcp.f32 %v1106_v36  ;;  %v2033_v36 = vpack.c.bf16 %v1438_v22, %v1437_v5 }
 0x3e5   :  { %2158 = vrcp.f32 %v1102_v24  ;;  %v1422_v24 = vld [vmem:[#allocation11 + $0x8] sm:$0xff] }
 0x3e6   :  { %2160 = vrcp.f32 %v1110_v23 }
 0x3e7   :  { %2162 = vrcp.f32 %v1114_v27  ;;  %v2204_v27 = vld [vmem:[#allocation2] sm:$0xff] }
 0x3e8   :  { %2164 = vrcp.f32 %v1118_v46 }
 0x3e9   :  { %2166 = vrcp.f32 %v1122_v28 }
 0x3ea   :  { %2168 = vrcp.f32 %v1126_v50 }
 0x3ee   :  { %v2157_v42 = vpop.eup %2156 }
 0x3ef   :  { %v2159_v49 = vpop.eup %2158  ;;  %v1182_v51 = vmul.f32 %v2157_v42, %v2844_v41 }
 0x3f0   :  { %v2161_v57 = vpop.eup %2160  ;;  %v1180_v55 = vmul.f32 %v2159_v49, %v2842_v21 }
 0x3f1   :  { %v2163_v45 = vpop.eup %2162  ;;  %1218 = vperm.xlu1 %2091, %v1182_v51   ;;  %v1184_v61 = vmul.f32 %v2161_v57, %v2850_v25 }
 0x3f2   :  { %1213 = vperm.xlu0 %2090, %v1180_v55   ;;  %v1186_v62 = vmul.f32 %v2163_v45, %v2858_v29  ;;  %v2165_v0 = vpop.eup %2164 }
 0x3f3   :  { %v1188_v1 = vmul.f32 %v2165_v0, %v2866_v32  ;;  %v2167_v41 = vpop.eup %2166 }
 0x3f4   :  { %v1190_v40 = vmul.f32 %v2167_v41, %v2852_v26  ;;  %v2169_v25 = vpop.eup %2168 }
 0x3f5   :  { %1223 = vperm.xlu1 %2091, %v1184_v61   ;;  %v1192_v29 = vmul.f32 %v2169_v25, %v2860_v43 }
 0x3f6   :  { %1228 = vperm.xlu0 %2090, %v1186_v62  }
 0x3fa   :  { %1233 = vperm.xlu0 %2090, %v1188_v1  }
 0x3fb   :  { %v1096_v3 = vpop.xlane.xlu0 %1095 }
 0x3fc   :  { %v1138_v21 = vrot.slane %v1096_v3, %v2803_v30  ;;  %v1134_v39 = vrot.slane %v1096_v3, %v2680_v48  ;;  %v1142_v34 = vrot.slane %v1096_v3, %v2806_v31  ;;  %v1146_v32 = vrot.slane %v1096_v3, %v2812_v35 }
 0x3fd   :  { %v1162_v26 = vrot.slane %v1096_v3, %v2829_v60  ;;  %v1150_v48 = vrot.slane %v1096_v3, %v2821_v53  ;;  %v1154_v31 = vrot.slane %v1096_v3, %v2809_v33  ;;  %v1158_v35 = vrot.slane %v1096_v3, %v2815_v37 }
 0x3fe   :  { %1238 = vperm.xlu0 %2090, %v1190_v40   ;;  %2170 = vrcp.f32 %v1138_v21 }
 0x3ff   :  { %2172 = vrcp.f32 %v1134_v39 }
 0x400   :  { %2174 = vrcp.f32 %v1142_v34 }
 0x401   :  { %2176 = vrcp.f32 %v1130_v6 }
 0x402   :  { %1243 = vperm.xlu0 %2090, %v1192_v29   ;;  %2178 = vrcp.f32 %v1146_v32 }
 0x403   :  { %2180 = vrcp.f32 %v1162_v26 }
 0x404   :  { %2182 = vrcp.f32 %v1150_v48 }
 0x405   :  { %2184 = vrcp.f32 %v1154_v31 }
 0x406   :  { %2186 = vrcp.f32 %v1158_v35 }
 0x408   :  { %v2171_v30 = vpop.eup %2170 }
 0x409   :  { %v2173_v7 = vpop.eup %2172  ;;  %v1198_v47 = vmul.f32 %v2171_v30, %v2882_v63 }
 0x40a   :  { %v2175_v8 = vpop.eup %2174  ;;  %v1196_v43 = vmul.f32 %v2173_v7, %v2874_v58 }
 0x40b   :  { %v2177_v9 = vpop.eup %2176  ;;  %1258 = vperm.xlu1 %2091, %v1198_v47   ;;  %v1200_v60 = vmul.f32 %v2175_v8, %v2886_v2 }
 0x40c   :  { %1253 = vperm.xlu0 %2090, %v1196_v43   ;;  %v2179_v53 = vpop.eup %2178  ;;  %v1194_v44 = vmul.f32 %v2177_v9, %v2868_v54 }
 0x40d   :  { %v2181_v10 = vpop.eup %2180  ;;  %v1202_v33 = vmul.f32 %v2179_v53, %v2889_v4  ;;  %v2029_v4 = vpack.c.bf16 %v1436_v15, %v1435_v13 }
 0x40e   :  { %v2183_v63 = vpop.eup %2182  ;;  %v1210_v58 = vmul.f32 %v2181_v10, %v2876_v59  ;;  %v1421_v59 = vld [vmem:[#allocation11] sm:$0xff]  ;;  %v2205_v10 = vld [vmem:[#allocation2 + $0x48] sm:$0xff] }
 0x40f   :  { %1263 = vperm.xlu1 %2091, %v1200_v60   ;;  %v1204_v11 = vmul.f32 %v2183_v63, %v2892_v56  ;;  %v2185_v52 = vpop.eup %2184  ;;  %2030 = vmatprep.subr.bf16.mxu1 %v2029_v4  ;;  %v2965_v56 = vpack.c.bf16 %v1422_v24, %v1421_v59  ;;  %v2207_v59 = vld [vmem:[#allocation2 + $0x50] sm:$0xff] }
 0x410   :  { %1248 = vperm.xlu0 %2090, %v1194_v44   ;;  %v1206_v37 = vmul.f32 %v2185_v52, %v2895_v38  ;;  %v2187_v2 = vpop.eup %2186  ;;  %2032 = vmatpush3.bf16.msra.mxu1 %v2029_v4  ;;  %v2206_v52 = vld [vmem:[#allocation2 + $0x40] sm:$0xff] }
 0x411   :  { %v1208_v54 = vmul.f32 %v2187_v2, %v2898_v12  ;;  %2034 = vmatprep.subr.bf16.mxu1 %v2033_v36 }
 0x413   :  { %1268 = vperm.xlu1 %2091, %v1202_v33  }
 0x414   :  { %1288 = vperm.xlu0 %2090, %v1210_v58   ;;  %2036 = vmatpush3.bf16.msra.mxu1 %v2033_v36 }
 0x415   :  { %2038 = vmatprep.subr.bf16.mxu1 %v2965_v56 }
 0x417   :  { %1273 = vperm.xlu1 %2091, %v1204_v11  }
 0x41b   :  { %1278 = vperm.xlu1 %2091, %v1206_v37  }
 0x41f   :  { %1283 = vperm.xlu1 %2091, %v1208_v54  }
 0x470   :  { %v1219_v38 = vpop.permute.xlu1 %1218 }
 0x471   :  { %v1214_v23 = vpop.permute.xlu0 %1213  ;;  %v1292_v12 = vmul.f32 %v1219_v38, %v2634_v14 }
 0x472   :  { %v1291_v46 = vmul.f32 %v2204_v27, %v1214_v23 }
 0x473   :  { %v1314_v49 = vsel %vm159_vm0, %v1292_v12, 0.0 }
 0x474   :  { %v1224_v28 = vpop.permute.xlu1 %1223  ;;  %v1307_v50 = vsel %vm159_vm0, %v1291_v46, 0.0  ;;  %v1315_v45 = vrot.slane %v1314_v49, 4  ;;  %v2208_v46 = vld [vmem:[#allocation2 + $0x38] sm:$0xff] }
 0x475   :  { %v1229_v42 = vpop.permute.xlu0 %1228  ;;  %v1293_v51 = vmul.f32 %v1224_v28, %v2636_v16  ;;  %v1308_v61 = vrot.slane %v1307_v50, 4 }
 0x476   :  { %v1294_v55 = vmul.f32 %v1229_v42, %v2643_v17  ;;  %v1316_v3 = vadd.f32 %v1315_v45, %v1314_v49 }
 0x477   :  { %v1321_v62 = vsel %vm159_vm0, %v1293_v51, 0.0  ;;  %v1309_v21 = vadd.f32 %v1308_v61, %v1307_v50 }
 0x478   :  { %v1328_v1 = vsel %vm159_vm0, %v1294_v55, 0.0  ;;  %v1322_v40 = vrot.slane %v1321_v62, 4  ;;  %v1317_v6 = vrot.slane %v1316_v3, 2 }
 0x479   :  { %v1234_v57 = vpop.permute.xlu0 %1233  ;;  %v1329_v39 = vrot.slane %v1328_v1, 4 }
 0x47a   :  { %v1295_v0 = vmul.f32 %v1234_v57, %v2645_v18  ;;  %v1323_v29 = vadd.f32 %v1322_v40, %v1321_v62  ;;  %v1310_v18 = vrot.slane %v1309_v21, 2  ;;  %v1318_v31 = vadd.f32 %v1317_v6, %v1316_v3 }
 0x47b   :  { %v1330_v30 = vadd.f32 %v1329_v39, %v1328_v1 }
 0x47c   :  { %v1335_v16 = vsel %vm159_vm0, %v1295_v0, 0.0  ;;  %v1324_v7 = vrot.slane %v1323_v29, 2  ;;  %v1311_v8 = vadd.f32 %v1310_v18, %v1309_v21  ;;  %v1319_v53 = vrot.slane %v1318_v31, 1 }
 0x47d   :  { %v1239_v14 = vpop.permute.xlu0 %1238  ;;  %v1336_v32 = vrot.slane %v1335_v16, 4  ;;  %v1331_v9 = vrot.slane %v1330_v30, 2 }
 0x47e   :  { %v1296_v41 = vmul.f32 %v1239_v14, %v2651_v19  ;;  %v1325_v44 = vadd.f32 %v1324_v7, %v1323_v29  ;;  %v1312_v58 = vrot.slane %v1311_v8, 1  ;;  %v1320_v4 = vadd.f32 %v1319_v53, %v1318_v31  ;;  %v2209_v14 = vld [vmem:[#allocation2 + $0x58] sm:$0xff]  ;;  %v2211_v7 = vld [vmem:[#allocation2 + $0x60] sm:$0xff] }
 0x47f   :  { %v1337_v47 = vadd.f32 %v1336_v32, %v1335_v16  ;;  %v1332_v2 = vadd.f32 %v1331_v9, %v1330_v30  ;;  %v2210_v16 = vld [vmem:[#allocation2 + $0x78] sm:$0xff] }
 0x480   :  { %v1342_v34 = vsel %vm159_vm0, %v1296_v41, 0.0  ;;  %v1326_v22 = vrot.slane %v1325_v44, 1  ;;  %v1313_v23 = vadd.f32 %v1312_v58, %v1311_v8 }
 0x481   :  { %v1244_v17 = vpop.permute.xlu0 %1243  ;;  %v1343_v26 = vrot.slane %v1342_v34, 4  ;;  %v1333_v42 = vrot.slane %v1332_v2, 1 }
 0x482   :  { %v1297_v25 = vmul.f32 %v1244_v17, %v2653_v20  ;;  %v1338_v20 = vrot.slane %v1337_v47, 2  ;;  %v1327_v61 = vadd.f32 %v1326_v22, %v1325_v44  ;;  %v1455_v3 = vsel %vm787_vm1, %v1320_v4, %v1313_v23 }
 0x483   :  { %v1344_v43 = vadd.f32 %v1343_v26, %v1342_v34  ;;  %v1334_v34 = vadd.f32 %v1333_v42, %v1332_v2 }
 0x484   :  { %v1349_v48 = vsel %vm159_vm0, %v1297_v25, 0.0  ;;  %v1339_v36 = vadd.f32 %v1338_v20, %v1337_v47  ;;  %v1456_v30 = vsel %vm789_vm2, %v1327_v61, %v1455_v3 }
 0x485   :  { %v1350_v19 = vrot.slane %v1349_v48, 4  ;;  %v1345_v11 = vrot.slane %v1344_v43, 2  ;;  %v1457_v20 = vsel %vm791_vm3, %v1334_v34, %v1456_v30 }
 0x486   :  { %v1340_v62 = vrot.slane %v1339_v36, 1 }
 0x487   :  { %v1351_v35 = vadd.f32 %v1350_v19, %v1349_v48  ;;  %v1346_v12 = vadd.f32 %v1345_v11, %v1344_v43 }
 0x488   :  { %v1341_v19 = vadd.f32 %v1340_v62, %v1339_v36 }
 0x489   :  { %v1352_v13 = vrot.slane %v1351_v35, 2  ;;  %v1347_v40 = vrot.slane %v1346_v12, 1 }
 0x48a   :  { %v1259_v60 = vpop.permute.xlu1 %1258 }
 0x48b   :  { %v1300_v33 = vmul.f32 %v2205_v10, %v1259_v60  ;;  %v1254_v63 = vpop.permute.xlu0 %1253  ;;  %v1353_v50 = vadd.f32 %v1352_v13, %v1351_v35  ;;  %v1348_v8 = vadd.f32 %v1347_v40, %v1346_v12 }
 0x48c   :  { %v1299_v37 = vmul.f32 %v2206_v52, %v1254_v63 }
 0x48d   :  { %v1370_v54 = vsel %vm159_vm0, %v1300_v33, 0.0  ;;  %v1354_v29 = vrot.slane %v1353_v50, 1 }
 0x48e   :  { %v1363_v15 = vsel %vm159_vm0, %v1299_v37, 0.0  ;;  %v1264_v5 = vpop.permute.xlu1 %1263  ;;  %v1371_v27 = vrot.slane %v1370_v54, 4  ;;  %v2212_v37 = vld [vmem:[#allocation2 + $0x68] sm:$0xff] }
 0x48f   :  { %v1301_v24 = vmul.f32 %v2207_v59, %v1264_v5  ;;  %v1249_v38 = vpop.permute.xlu0 %1248  ;;  %v1364_v49 = vrot.slane %v1363_v15, 4  ;;  %v1355_v10 = vadd.f32 %v1354_v29, %v1353_v50 }
 0x490   :  { %v1298_v28 = vmul.f32 %v2208_v46, %v1249_v38  ;;  %v1372_v21 = vadd.f32 %v1371_v27, %v1370_v54  ;;  %v1458_v54 = vsel %vm793_vm4, %v1341_v19, %v1457_v20 }
 0x491   :  { %v1377_v51 = vsel %vm159_vm0, %v1301_v24, 0.0  ;;  %v1365_v17 = vadd.f32 %v1364_v49, %v1363_v15  ;;  %v1459_v5 = vsel %vm795_vm5, %v1348_v8, %v1458_v54 }
 0x492   :  { %v1378_v57 = vrot.slane %v1377_v51, 4  ;;  %v1356_v55 = vsel %vm159_vm0, %v1298_v28, 0.0  ;;  %v1269_v45 = vpop.permute.xlu1 %1268  ;;  %v1373_v43 = vrot.slane %v1372_v21, 2  ;;  %v1460_v27 = vsel %vm797_vm6, %v1355_v10, %v1459_v5  ;;  %v2213_v28 = vld [vmem:[#allocation2 + $0x70] sm:$0xff]  ;;  %v1425_v10 = vld [vmem:[#allocation11 + $0x20] sm:$0xff] }
 0x493   :  { %v1357_v0 = vrot.slane %v1356_v55, 4  ;;  %v1302_v1 = vmul.f32 %v2209_v14, %v1269_v45  ;;  %v1289_v41 = vpop.permute.xlu0 %1288  ;;  %v1366_v35 = vrot.slane %v1365_v17, 2 }
 0x494   :  { %v1306_v39 = vmul.f32 %v2210_v16, %v1289_v41  ;;  %v1379_v32 = vadd.f32 %v1378_v57, %v1377_v51  ;;  %v1374_v13 = vadd.f32 %v1373_v43, %v1372_v21 }
 0x495   :  { %v1358_v25 = vadd.f32 %v1357_v0, %v1356_v55  ;;  %v1384_v6 = vsel %vm159_vm0, %v1302_v1, 0.0  ;;  %v1367_v4 = vadd.f32 %v1366_v35, %v1365_v17 }
 0x496   :  { %v1385_v18 = vrot.slane %v1384_v6, 4  ;;  %v1412_v26 = vsel %vm159_vm0, %v1306_v39, 0.0  ;;  %v1274_v48 = vpop.permute.xlu1 %1273  ;;  %v1380_v33 = vrot.slane %v1379_v32, 2  ;;  %v1375_v57 = vrot.slane %v1374_v13, 1 }
 0x497   :  { %v1359_v31 = vrot.slane %v1358_v25, 2  ;;  %v1303_v47 = vmul.f32 %v2211_v7, %v1274_v48  ;;  %v1413_v53 = vrot.slane %v1412_v26, 4  ;;  %v1368_v55 = vrot.slane %v1367_v4, 1  ;;  %v1423_v7 = vld [vmem:[#allocation11 + $0x10] sm:$0xff] }
 0x498   :  { %v1386_v9 = vadd.f32 %v1385_v18, %v1384_v6  ;;  %v1381_v24 = vadd.f32 %v1380_v33, %v1379_v32  ;;  %v1376_v21 = vadd.f32 %v1375_v57, %v1374_v13  ;;  %v1426_v33 = vld [vmem:[#allocation11 + $0x28] sm:$0xff]  ;;  %v1431_v13 = vld [vmem:[#allocation11 + $0x50] sm:$0xff] }
 0x499   :  { %v1360_v60 = vadd.f32 %v1359_v31, %v1358_v25  ;;  %v1391_v44 = vsel %vm159_vm0, %v1303_v47, 0.0  ;;  %v1414_v36 = vadd.f32 %v1413_v53, %v1412_v26  ;;  %v1369_v16 = vadd.f32 %v1368_v55, %v1367_v4  ;;  %v1424_v47 = vld [vmem:[#allocation11 + $0x18] sm:$0xff]  ;;  %v1434_v4 = vld [vmem:[#allocation11 + $0x68] sm:$0xff] }
 0x49a   :  { %v1392_v63 = vrot.slane %v1391_v44, 4  ;;  %v1279_v58 = vpop.permute.xlu1 %1278  ;;  %v1387_v52 = vrot.slane %v1386_v9, 2  ;;  %v1382_v62 = vrot.slane %v1381_v24, 1  ;;  %v2041_v53 = vpack.c.bf16 %v1424_v47, %v1423_v7 }
 0x49b   :  { %v1361_v11 = vrot.slane %v1360_v60, 1  ;;  %v1304_v2 = vmul.f32 %v2212_v37, %v1279_v58  ;;  %v1415_v45 = vrot.slane %v1414_v36, 2  ;;  %v1462_v18 = vsel %vm787_vm1, %v1376_v21, %v1369_v16  ;;  %v1427_v58 = vld [vmem:[#allocation11 + $0x30] sm:$0xff]  ;;  %v1429_v37 = vld [vmem:[#allocation11 + $0x40] sm:$0xff] }
 0x49c   :  { %v1393_v15 = vadd.f32 %v1392_v63, %v1391_v44  ;;  %v1388_v46 = vadd.f32 %v1387_v52, %v1386_v9  ;;  %v1383_v34 = vadd.f32 %v1382_v62, %v1381_v24  ;;  %v1419_v44 = vld [vmem:[#allocation5] sm:$0xff]  ;;  %v2045_v63 = vpack.c.bf16 %v1426_v33, %v1425_v10 }
 0x49d   :  { %v1362_v22 = vadd.f32 %v1361_v11, %v1360_v60  ;;  %v1398_v59 = vsel %vm159_vm0, %v1304_v2, 0.0  ;;  %v1416_v39 = vadd.f32 %v1415_v45, %v1414_v36  ;;  %v1428_v11 = vld [vmem:[#allocation11 + $0x38] sm:$0xff]  ;;  %v1430_v2 = vld [vmem:[#allocation11 + $0x48] sm:$0xff] }
 0x49e   :  { %v1394_v38 = vrot.slane %v1393_v15, 2  ;;  %v1399_v23 = vrot.slane %v1398_v59, 4  ;;  %v1284_v12 = vpop.permute.xlu1 %1283  ;;  %v1389_v1 = vrot.slane %v1388_v46, 1  ;;  %v1463_v30 = vsel %vm789_vm2, %v1383_v34, %v1462_v18  ;;  %v1420_v36 = vld [vmem:[#allocation5 + $0x8] sm:$0xff] }
 0x49f   :  { %v1305_v42 = vmul.f32 %v2213_v28, %v1284_v12  ;;  %v1461_v49 = vsel %vm799_vm7, %v1362_v22, %v1460_v27  ;;  %v1417_v26 = vrot.slane %v1416_v39, 1  ;;  %v2049_v52 = vpack.c.bf16 %v1428_v11, %v1427_v58  ;;  %v2214_v28 = vld [vmem:[#allocation7 + $0x8] sm:$0xff] }
 0x4a0   :  { %v1395_v51 = vadd.f32 %v1394_v38, %v1393_v15  ;;  %v1400_v50 = vadd.f32 %v1399_v23, %v1398_v59  ;;  %1968 = vmatprep.mubr.msk.f32.mxu1 %vm159_vm0, %v1461_v49  ;;  %v1390_v6 = vadd.f32 %v1389_v1, %v1388_v46  ;;  %v2053_v54 = vpack.c.bf16 %v1430_v2, %v1429_v37  ;;  %v1432_v15 = vld [vmem:[#allocation11 + $0x58] sm:$0xff]  ;;  %v1857_v59 = vld [vmem:[%s3079_s8] ss:$0 sm:$0xff] }
 0x4a1   :  { %v1405_v61 = vsel %vm159_vm0, %v1305_v42, 0.0  ;;  %v1418_v9 = vadd.f32 %v1417_v26, %v1416_v39  ;;  %v2057_v5 = vpack.c.bf16 %v1432_v15, %v1431_v13  ;;  %v2215_v42 = vld [vmem:[#allocation7] sm:$0xff]  ;;  %v1696_v26 = vld [vmem:[%s3080_s9 + $0x18] sm:$0xff] }
 0x4a2   :  { %v1401_v0 = vrot.slane %v1400_v50, 2  ;;  %v1406_v14 = vrot.slane %v1405_v61, 4  ;;  %v1396_v41 = vrot.slane %v1395_v51, 1  ;;  %v1464_v31 = vsel %vm791_vm3, %v1390_v6, %v1463_v30  ;;  %v1693_v6 = vld [vmem:[%s3080_s9] sm:$0xff] }
 0x4a4   :  { %v1402_v3 = vadd.f32 %v1401_v0, %v1400_v50  ;;  %v1407_v40 = vadd.f32 %v1406_v14, %v1405_v61  ;;  %v1397_v29 = vadd.f32 %v1396_v41, %v1395_v51 }
 0x4a6   :  { %v1403_v17 = vrot.slane %v1402_v3, 1  ;;  %v1408_v25 = vrot.slane %v1407_v40, 2  ;;  %v1465_v8 = vsel %vm793_vm4, %v1397_v29, %v1464_v31  ;;  %v1694_v29 = vld [vmem:[%s3080_s9 + $0x8] sm:$0xff] }
 0x4a7   :  { %v2065_v18 = vpack.c.bf16 %v1694_v29, %v1693_v6 }
 0x4a8   :  { %v1409_v32 = vadd.f32 %v1408_v25, %v1407_v40  ;;  %v1404_v48 = vadd.f32 %v1403_v17, %v1402_v3 }
 0x4a9   :  { %2066 = vmatprep.subr.bf16.mxu0 %v2065_v18 }
 0x4aa   :  { %v1410_v19 = vrot.slane %v1409_v32, 1  ;;  %v1466_v35 = vsel %vm795_vm5, %v1404_v48, %v1465_v8  ;;  %2068 = vmatpush3.bf16.msra.mxu0 %v2065_v18 }
 0x4ac   :  { %v1411_v43 = vadd.f32 %v1410_v19, %v1409_v32  ;;  %v1695_v32 = vld [vmem:[%s3080_s9 + $0x10] sm:$0xff]  ;;  %s2439_s9 = smov [#allocation15]  }
 0x4ad   :  { %v2069_v48 = vpack.c.bf16 %v1696_v26, %v1695_v32  ;;  %s1815_s3 = sshll.u32 %s2439_s9, 4  ;;  %s1816_s3 = int_to_ptr.vmem [resolvable:$true] %s1815_s3 }
 0x4ae   :  { %v1467_v60 = vsel %vm797_vm6, %v1411_v43, %v1466_v35  ;;  %s2370_s24 = scalar_lea.vmem %s1816_s3, 256  ;;  %p2375_p1 = scmp.lt.s32.totalorder %s1816_s3, %s1816_s3 }
 0x4af   :  { %v1468_v20 = vsel %vm799_vm7, %v1418_v9, %v1467_v60  ;;  %2070 = vmatprep.subr.bf16.mxu0 %v2069_v48  ;;  %p2371_p0 = scmp.ne.s32.totalorder %s1816_s3, %s2370_s24  ;;  %p2376_p2 = scmp.lt.s32.totalorder %s2370_s24, %s2370_s24 }
 0x4b0   :  { %1969 = vmatmul.mubr.msk.f32.vlgmr.msra.gmra.mrb[2].mxu1 %vm159_vm0, %v1468_v20  ;;  %2072 = vmatpush3.bf16.msra.mxu0 %v2069_v48 }
 0x4b1   :  { %2040 = vmatpush3.bf16.msra.mxu1 %v2965_v56  ;;  %1999 = vmatprep.mubr.msk.f32.mxu1 %vm1548_vm9, %v1419_v44  ;;  %v1433_v56 = vld [vmem:[#allocation11 + $0x60] sm:$0xff]  ;;  %p2377_p3 = por %p2376_p2, %p2375_p1 }
 0x4b2   :  { %2042 = vmatprep.subr.bf16.mxu1 %v2041_v53  ;;  %v2061_v22 = vpack.c.bf16 %v1434_v4, %v1433_v56 }
 0x4b3   :  { %p2378_p4 = pnand %p2377_p3, %p2371_p0 }
 0x4b5   :  { %2044 = vmatpush3.bf16.msra.mxu1 %v2041_v53 }
 0x4b6   :  { %2046 = vmatprep.subr.bf16.mxu1 %v2045_v63 }
 0x4b9   :  { %2048 = vmatpush3.bf16.msra.mxu1 %v2045_v63 }
 0x4ba   :  { %2050 = vmatprep.subr.bf16.mxu1 %v2049_v52 }
 0x4bd   :  { %2052 = vmatpush3.bf16.msra.mxu1 %v2049_v52 }
 0x4be   :  { %2054 = vmatprep.subr.bf16.mxu1 %v2053_v54 }
 0x4c1   :  { %2056 = vmatpush3.bf16.msra.mxu1 %v2053_v54 }
 0x4c2   :  { %2058 = vmatprep.subr.bf16.mxu1 %v2057_v5 }
 0x4c5   :  { %2060 = vmatpush3.bf16.msra.mxu1 %v2057_v5 }
 0x4c6   :  { %2062 = vmatprep.subr.bf16.mxu1 %v2061_v22 }
 0x4c9   :  { %2064 = vmatpush3.bf16.msra.mxu1 %v2061_v22 }
 0x4cc   :  { %2000 = vmatmul.mubr.msk.f32.vlgmr.msra.gmra.mrb[2].mxu1 %vm1548_vm9, %v1420_v36 }
 0x59f   :  { %v2001_v24 = vpop.f32.mrb[2].mxu1 }
 0x5a0   :  { %v1638_v38 = vadd.f32 %v2001_v24, %v1857_v59  ;;  %v1621_v23 = vpop.f32.mrb[3].mxu1 }
 0x5a1   :  { %v1637_v12 = vadd.f32 %v1857_v59, %v1621_v23 }
 0x5a2   :  { %2188 = vtanh.f32 %v1638_v38  ;;  %v1859_v49 = vmul.f32 -1.442695, %v1638_v38 }
 0x5a3   :  { %2190 = vtanh.f32 %v1637_v12  ;;  %v1858_v51 = vmul.f32 -1.442695, %v1637_v12 }
 0x5a4   :  { %2192 = vpow2.f32 %v1859_v49 }
 0x5a5   :  { %2194 = vpow2.f32 %v1858_v51 }
 0x5ac   :  { %v2189_v27 = vpop.eup %2188 }
 0x5ad   :  { %v2191_v46 = vpop.eup %2190  ;;  %1665 = vrot.lane.b32.xlu0 %v2189_v27, %s2437_s17 }
 0x5ae   :  { %1663 = vrot.lane.b32.xlu1 %v2191_v46, %s2437_s17  ;;  %v2193_v50 = vpop.eup %2192 }
 0x5af   :  { %v2195_v57 = vpop.eup %2194  ;;  %v1646_v55 = vadd.f32 1.0, %v2193_v50 }
 0x5b0   :  { %v1645_v45 = vadd.f32 1.0, %v2195_v57 }
 0x5b1   :  { %1655 = vrot.lane.b32.xlu0 %v2214_v28, %s2438_s18  ;;  %2196 = vrcp.f32 %v1646_v55 }
 0x5b2   :  { %1653 = vrot.lane.b32.xlu1 %v2215_v42, %s2438_s18  ;;  %2198 = vrcp.f32 %v1645_v45 }
 0x5bb   :  { %v2197_v61 = vpop.eup %2196 }
 0x5bc   :  { %v2199_v0 = vpop.eup %2198 }
 0x61f   :  { %v1666_v62 = vpop.permute.xlu0 %1665 }
 0x620   :  { %v1670_v14 = vmul.f32 %v2197_v61, %v1666_v62  ;;  %v1664_v1 = vpop.permute.xlu1 %1663 }
 0x621   :  { %v1669_v41 = vmul.f32 %v2199_v0, %v1664_v1 }
 0x622   :  { %1675 = vrot.lane.b32.xlu0 %v1670_v14, %s2438_s18 }
 0x623   :  { %1673 = vrot.lane.b32.xlu1 %v1669_v41, %s2438_s18  ;;  %v1656_v3 = vpop.permute.xlu0 %1655 }
 0x624   :  { %v1654_v40 = vpop.permute.xlu1 %1653  ;;  %v1660_v21 = vmul.f32 %v2197_v61, %v1656_v3 }
 0x625   :  { %v1659_v16 = vmul.f32 %v2199_v0, %v1654_v40 }
 0x694   :  { %v1676_v39 = vpop.permute.xlu0 %1675 }
 0x695   :  { %v1680_v34 = vadd.f32 %v1676_v39, %v1660_v21  ;;  %v1674_v17 = vpop.permute.xlu1 %1673 }
 0x696   :  { %v1679_v25 = vadd.f32 %v1674_v17, %v1659_v16 }
 0x697   :  { %2200 = vtanh.f32 %v1680_v34 }
 0x698   :  { %2202 = vtanh.f32 %v1679_v25 }
 0x6a1   :  { %v2201_v30 = vpop.eup %2200 }
 0x6a2   :  { %v2203_v19 = vpop.eup %2202  ;;  %1687 = vrot.lane.b32.xlu0 %v2201_v30, %s2437_s17 }
 0x6a3   :  { %1685 = vrot.lane.b32.xlu1 %v2203_v19, %s2437_s17 }
 0x714   :  { %v1688_v31 = vpop.permute.xlu0 %1687 }
 0x715   :  { %v1692_v7 = vmul.f32 %v2197_v61, %v1688_v31  ;;  %v1686_v47 = vpop.permute.xlu1 %1685 }
 0x716   :  { %v1691_v8 = vmul.f32 %v2199_v0, %v1686_v47 }
 0x717   :  { %1708 = vrot.lane.b32.xlu0 %v1692_v7, %s2438_s18 }
 0x718   :  { %1706 = vrot.lane.b32.xlu1 %v1691_v8, %s2438_s18 }
 0x789   :  { %v1709_v43 = vpop.permute.xlu0 %1708 }
 0x78a   :  { %v1794_v9 = vsel %vm159_vm0, %v1709_v43, %v1680_v34  ;;  %v1707_v35 = vpop.permute.xlu1 %1706 }
 0x78b   :  { %v1793_v60 = vsel %vm159_vm0, %v1707_v35, %v1679_v25  ;;  %2010 = vmatprep.mubr.msk.f32.mxu0 %vm159_vm0, %v1707_v35  ;;  %1797 = vst.msk [vmem:[#allocation15 + $0x8] sm:$0xff] %vm1795_vm10, %v1794_v9 }
 0x78c   :  { %2011 = vmatmul.mubr.msk.f32.vlgmr.msra.gmra.mrb[16].mxu0 %vm159_vm0, %v1709_v43  ;;  %1796 = vst.msk [vmem:[#allocation15] sm:$0xff] %vm1795_vm10, %v1793_v60 }
 0x78d   :  { %2381 = shalt.err (!%p2378_p4)
}
 0x78e   :  { %s2382_s28 = scalar_lea.hbm %s3083_s12, 256 }
 0x78f   :  { %p2383_p5 = scmp.ne.s32.totalorder %s3083_s12, %s2382_s28  ;;  %p2386_p6 = scmp.lt.u32.totalorder %s2382_s28, %s3083_s12 }
 0x791   :  { %p2388_p7 = pnand %p2386_p6, %p2383_p5 }
 0x793   :  { %2391 = shalt.err (!%p2388_p7)
}
 0x794   :  { %1821 = dma.vmem_to_hbm [thread:$0]  %s1816_s3, 256, %s3083_s12, [#allocation16], %s2428_s15, %s2428_s15, %s2429_s16  }
 0x795   :  { %v1860_v53 = vld [vmem:[%s3081_s10] ss:$0 sm:$0xff]  ;;  %s2440_s5 = smov [#allocation14]  }
 0x796   :  { %s1803_s13 = sshll.u32 %s2440_s5, 4  ;;  %s1804_s13 = int_to_ptr.vmem [resolvable:$true] %s1803_s13 }
 0x797   :  { %s2392_s17 = scalar_lea.vmem %s1804_s13, 256  ;;  %p2397_p9 = scmp.lt.s32.totalorder %s1804_s13, %s1804_s13 }
 0x798   :  { %p2393_p8 = scmp.ne.s32.totalorder %s1804_s13, %s2392_s17  ;;  %p2398_p10 = scmp.lt.s32.totalorder %s2392_s17, %s2392_s17 }
 0x79a   :  { %p2399_p11 = por %p2398_p10, %p2397_p9 }
 0x79c   :  { %p2400_p12 = pnand %p2399_p11, %p2393_p8 }
 0x85f   :  { %v2012_v44 = vpop.f32.mrb[16].mxu0 }
 0x860   :  { %v1786_v20 = vadd.f32 %v2012_v44, %v1860_v53  ;;  %v1780_v10 = vpop.f32.mrb[17].mxu0 }
 0x861   :  { %v1781_v33 = vadd.f32 %v1860_v53, %v1780_v10 }
 0x862   :  { %1790 = vst [vmem:[#allocation14 + $0x8] sm:$0xff] %v1786_v20 }
 0x863   :  { %1789 = vst [vmem:[#allocation14] sm:$0xff] %v1781_v33 }
 0x864   :  { %2403 = shalt.err (!%p2400_p12)
}
 0x865   :  { %s2404_s10 = scalar_lea.hbm %s3082_s11, 256 }
 0x866   :  { %p2405_p13 = scmp.ne.s32.totalorder %s3082_s11, %s2404_s10  ;;  %p2408_p0 = scmp.lt.u32.totalorder %s2404_s10, %s3082_s11 }
 0x868   :  { %p2410_p1 = pnand %p2408_p0, %p2405_p13 }
 0x86a   :  { %2413 = shalt.err (!%p2410_p1)
}
 0x86b   :  { %1809 = dma.vmem_to_hbm [thread:$0]  %s1804_s13, 256, %s3082_s11, [#allocation4], %s2428_s15, %s2428_s15, %s2429_s16  }
 0x86c   :  { %2422 = dma.done.wait [#allocation4], 256  }
 0x86d   :  { %2423 = vsyncadd [#allocation4], 4294967040 }
 0x86e   :  { %2424 = dma.done.wait [#allocation16], 256  }
 0x86f   :  { %2425 = vsyncadd [#allocation16], 4294967040 }
 0x870   :  { %1828 = vsyncpa [#allocation3], 1 }
 0x871   :  { %1829 = vsyncpa [#allocation6], 1 }
 0x872   :  { %1830 = vsyncpa [#allocation9], 1 }
 0x873   :  { %1831 = vsyncpa [#allocation12], 1 }
 0x874   :  { %1832 = vsyncpa [#allocation4], 1 }
 0x875   :  { %1833 = vsyncpa [#allocation16], 1 }

</bundles_post_ra>
